<compile_context>
chip_gen: v7x
topology: tpu7x:2x2x1
jax: 0.10.0
libtpu: 0.0.40
codegen_flags: <defaults>
</compile_context>

<pallas_src>
import functools

import jax
import jax.numpy as jnp
from jax.experimental import pallas as pl
from jax.experimental.pallas import tpu as pltpu


# ------------------------------ in-kernel helpers ------------------------------


def _layer_norm_f32(y, g, b, eps):
    mu = jnp.mean(y, axis=-1, keepdims=True)
    var = jnp.mean((y - mu) * (y - mu), axis=-1, keepdims=True)
    return (y - mu) * jax.lax.rsqrt(var + eps) * g + b


def _gelu_tanh(y):
    # TODO(synk): HF BERT uses erf-GELU; tanh approximation has a small numeric deviation.
    c = 0.7978845608028654
    return 0.5 * y * (1.0 + jnp.tanh(c * (y + 0.044715 * y * y * y)))


# ------------------------------ fused whole-model kernel ------------------------------


def _bert_kernel(emb_ref, mask_ref, embg_ref, embb_ref,
                 wqkv_ref, bqkv_ref, wo_ref, bo_ref, ln1g_ref, ln1b_ref,
                 wi_ref, bi_ref, wo2_ref, bo2_ref, ln2g_ref, ln2b_ref,
                 wp_ref, bp_ref, wc_ref, bc_ref,
                 score_ref,
                 x_sc, ctx_sc,
                 *, nH, dH, eps):
    """One grid step = (batch element b, encoder layer l).

    Residual stream x lives in x_sc (f32 VMEM) across the whole 'arbitrary' layer axis.
    Embedding LayerNorm is done at l == 0; pooler + classifier at l == L-1.
    """
    l = pl.program_id(1)
    H = nH * dH
    scale = 1.0 / float(dH) ** 0.5

    @pl.when(l == 0)
    def _():
        x_sc[...] = _layer_norm_f32(emb_ref[0].astype(jnp.float32),
                                    embg_ref[...], embb_ref[...], eps)

    x = x_sc[...]                               # (S, H) f32 residual stream
    m = mask_ref[0]                             # (1, S) additive mask (0 / -1e4), f32

    # ---- fused Q|K|V projection: one (H, 3H) matmul ----
    qkv = jnp.dot(x.astype(jnp.bfloat16), wqkv_ref[0],
                  preferred_element_type=jnp.float32) + bqkv_ref[0]   # (S, 3H) f32

    # ---- multi-head self-attention; per-head results stored straight into ctx scratch ----
    # TODO(synk): real sizes (S=512, nH=12) want a head grid axis / fori_loop with a
    # head-contiguous QKV layout to bound live ranges; trivial at S=8, nH=4.
    for h in range(nH):
        q = (qkv[:, h * dH:(h + 1) * dH] * scale).astype(jnp.bfloat16)        # scale folded into Q
        k = qkv[:, H + h * dH:H + (h + 1) * dH].astype(jnp.bfloat16)
        v = qkv[:, 2 * H + h * dH:2 * H + (h + 1) * dH].astype(jnp.bfloat16)
        s = jax.lax.dot_general(q, k, (((1,), (1,)), ((), ())),
                                preferred_element_type=jnp.float32) + m        # (S, S)
        s = s - jnp.max(s, axis=-1, keepdims=True)
        p = jnp.exp(s)
        p = p * pl.reciprocal(jnp.sum(p, axis=-1, keepdims=True), approx=True)
        ctx_sc[:, h * dH:(h + 1) * dH] = jnp.dot(
            p.astype(jnp.bfloat16), v, preferred_element_type=jnp.float32)

    # ---- attention output projection + residual + LayerNorm (fused epilogue) ----
    y = jnp.dot(ctx_sc[...].astype(jnp.bfloat16), wo_ref[0],
                preferred_element_type=jnp.float32) + bo_ref[0] + x
    x1 = _layer_norm_f32(y, ln1g_ref[0], ln1b_ref[0], eps)

    # ---- FFN: in-proj + GELU, out-proj + residual + LayerNorm (fused epilogues) ----
    hmid = jnp.dot(x1.astype(jnp.bfloat16), wi_ref[0],
                   preferred_element_type=jnp.float32) + bi_ref[0]
    hmid = _gelu_tanh(hmid)
    y2 = jnp.dot(hmid.astype(jnp.bfloat16), wo2_ref[0],
                 preferred_element_type=jnp.float32) + bo2_ref[0] + x1
    x2 = _layer_norm_f32(y2, ln2g_ref[0], ln2b_ref[0], eps)
    x_sc[...] = x2

    # ---- pooler + 1-unit classifier, only after the last layer ----
    @pl.when(l == pl.num_programs(1) - 1)
    def _():
        cls = x2[0:1, :]                                                       # [CLS] row (1, H)
        pooled = jnp.tanh(jnp.dot(cls.astype(jnp.bfloat16), wp_ref[...],
                                  preferred_element_type=jnp.float32) + bp_ref[...])
        # classifier as a lane reduction instead of a (1,1) matmul output
        score = jnp.sum(pooled * wc_ref[...], axis=-1, keepdims=True) + bc_ref[...]
        score_ref[0] = score


# ------------------------------ host-side glue ------------------------------


def init_params(key, *, V, H, I, nH, L, max_pos, type_vocab=2):
    ks = jax.random.split(key, 16)

    def nrm(k, shape, dtype=jnp.bfloat16):
        return (0.02 * jax.random.normal(k, shape, jnp.float32)).astype(dtype)

    return {
        "num_heads": nH,
        "word_emb": nrm(ks[0], (V, H), jnp.float32),
        "pos_emb": nrm(ks[1], (max_pos, H), jnp.float32),
        "type_emb": nrm(ks[2], (type_vocab, H), jnp.float32),
        "emb_ln_g": jnp.ones((1, H), jnp.float32),
        "emb_ln_b": jnp.zeros((1, H), jnp.float32),
        # stacked per-layer weights (L, ...), fused Q|K|V columns [0:H)=Q [H:2H)=K [2H:3H)=V
        "w_qkv": nrm(ks[3], (L, H, 3 * H)),
        "b_qkv": jnp.zeros((L, 1, 3 * H), jnp.float32),
        "wo": nrm(ks[4], (L, H, H)), "bo": jnp.zeros((L, 1, H), jnp.float32),
        "ln1_g": jnp.ones((L, 1, H), jnp.float32), "ln1_b": jnp.zeros((L, 1, H), jnp.float32),
        "wi": nrm(ks[5], (L, H, I)), "bi": jnp.zeros((L, 1, I), jnp.float32),
        "wo2": nrm(ks[6], (L, I, H)), "bo2": jnp.zeros((L, 1, H), jnp.float32),
        "ln2_g": jnp.ones((L, 1, H), jnp.float32), "ln2_b": jnp.zeros((L, 1, H), jnp.float32),
        "pooler_w": nrm(ks[7], (H, H)),
        "pooler_b": jnp.zeros((1, H), jnp.float32),
        # classifier = first row of cls.seq_relationship in the reference (synthetic here)
        "cls_w": nrm(ks[8], (1, H), jnp.float32),
        "cls_b": jnp.zeros((1, 1), jnp.float32),
    }


def bert_forward(params, tokens, token_type_ids, attention_mask):
    B, S = tokens.shape
    H = params["word_emb"].shape[1]
    L = params["w_qkv"].shape[0]
    nH = params["num_heads"]
    I = params["wi"].shape[-1]

    # Embedding gathers are glue (memory op) in plain JAX.
    emb = (params["word_emb"][tokens]
           + params["pos_emb"][jnp.arange(S)][None, :, :]
           + params["type_emb"][token_type_ids]).astype(jnp.float32)          # (B, S, H)
    addmask = ((1.0 - attention_mask.astype(jnp.float32)) * -10000.0).reshape(B, 1, S)

    lay3 = lambda b, l: (l, 0, 0)    # per-layer weight blocks (the 'arbitrary' axis)
    bat3 = lambda b, l: (b, 0, 0)    # per-batch blocks (the 'parallel' axis)
    c2 = lambda b, l: (0, 0)         # constant blocks (loaded once, stay resident)

    score = pl.pallas_call(
        functools.partial(_bert_kernel, nH=nH, dH=H // nH, eps=1e-12),
        grid=(B, L),
        in_specs=[
            pl.BlockSpec((1, S, H), bat3),          # embeddings
            pl.BlockSpec((1, 1, S), bat3),          # additive attention mask
            pl.BlockSpec((1, H), c2),               # emb LN gamma
            pl.BlockSpec((1, H), c2),               # emb LN beta
            pl.BlockSpec((1, H, 3 * H), lay3),      # w_qkv
            pl.BlockSpec((1, 1, 3 * H), lay3),      # b_qkv
            pl.BlockSpec((1, H, H), lay3),          # wo
            pl.BlockSpec((1, 1, H), lay3),          # bo
            pl.BlockSpec((1, 1, H), lay3),          # ln1 gamma
            pl.BlockSpec((1, 1, H), lay3),          # ln1 beta
            pl.BlockSpec((1, H, I), lay3),          # wi
            pl.BlockSpec((1, 1, I), lay3),          # bi
            pl.BlockSpec((1, I, H), lay3),          # wo2
            pl.BlockSpec((1, 1, H), lay3),          # bo2
            pl.BlockSpec((1, 1, H), lay3),          # ln2 gamma
            pl.BlockSpec((1, 1, H), lay3),          # ln2 beta
            pl.BlockSpec((H, H), c2),               # pooler_w
            pl.BlockSpec((1, H), c2),               # pooler_b
            pl.BlockSpec((1, H), c2),               # cls_w (row vector)
            pl.BlockSpec((1, 1), c2),               # cls_b
        ],
        out_specs=pl.BlockSpec((1, 1, 1), bat3),
        out_shape=jax.ShapeDtypeStruct((B, 1, 1), jnp.float32),
        scratch_shapes=[pltpu.VMEM((S, H), jnp.float32),   # residual stream x
                        pltpu.VMEM((S, H), jnp.float32)],  # attention context
        compiler_params=pltpu.CompilerParams(
            dimension_semantics=("parallel", "arbitrary")),
    )(emb, addmask,
      params["emb_ln_g"], params["emb_ln_b"],
      params["w_qkv"], params["b_qkv"],
      params["wo"], params["bo"], params["ln1_g"], params["ln1_b"],
      params["wi"], params["bi"], params["wo2"], params["bo2"],
      params["ln2_g"], params["ln2_b"],
      params["pooler_w"], params["pooler_b"],
      params["cls_w"], params["cls_b"])

    return score.reshape(B)


def model_forward(params, inputs):
    tokens, token_ids, masks = inputs
    return bert_forward(params, tokens, token_ids, masks)      # (B,)


# --------------------------------- main -------------------------------------

if __name__ == "__main__":
    B, S, H, nH, I, V, L = 2, 8, 32, 4, 64, 64, 2

    params = init_params(jax.random.PRNGKey(0), V=V, H=H, I=I, nH=nH, L=L, max_pos=S)

    k_tok, _ = jax.random.split(jax.random.PRNGKey(0))
    tokens = jax.random.randint(k_tok, (B, S), 0, V, dtype=jnp.int32)
    token_ids = jnp.zeros((B, S), jnp.int32)
    masks = jnp.ones((B, S), jnp.int32)

    score = model_forward(params, (tokens, token_ids, masks))
    jax.block_until_ready(score)
    assert score.shape == (B,)
    print("KERNEL_OK")
</pallas_src>

<mosaic_0001>
module attributes {stable_mosaic.version = 11 : i64} {
  func.func @_bert_kernel(%arg0: i32, %arg1: i32, %arg2: memref<1x8x32xf32, #tpu.memory_space<vmem>>, %arg3: memref<1x1x8xf32, #tpu.memory_space<vmem>>, %arg4: memref<1x32xf32, #tpu.memory_space<vmem>>, %arg5: memref<1x32xf32, #tpu.memory_space<vmem>>, %arg6: memref<1x32x96xbf16, #tpu.memory_space<vmem>>, %arg7: memref<1x1x96xf32, #tpu.memory_space<vmem>>, %arg8: memref<1x32x32xbf16, #tpu.memory_space<vmem>>, %arg9: memref<1x1x32xf32, #tpu.memory_space<vmem>>, %arg10: memref<1x1x32xf32, #tpu.memory_space<vmem>>, %arg11: memref<1x1x32xf32, #tpu.memory_space<vmem>>, %arg12: memref<1x32x64xbf16, #tpu.memory_space<vmem>>, %arg13: memref<1x1x64xf32, #tpu.memory_space<vmem>>, %arg14: memref<1x64x32xbf16, #tpu.memory_space<vmem>>, %arg15: memref<1x1x32xf32, #tpu.memory_space<vmem>>, %arg16: memref<1x1x32xf32, #tpu.memory_space<vmem>>, %arg17: memref<1x1x32xf32, #tpu.memory_space<vmem>>, %arg18: memref<32x32xbf16, #tpu.memory_space<vmem>>, %arg19: memref<1x32xf32, #tpu.memory_space<vmem>>, %arg20: memref<1x32xf32, #tpu.memory_space<vmem>>, %arg21: memref<1x1xf32, #tpu.memory_space<vmem>>, %arg22: memref<1x1x1xf32, #tpu.memory_space<vmem>>, %arg23: memref<8x32xf32, #tpu.memory_space<vmem>>, %arg24: memref<8x32xf32, #tpu.memory_space<vmem>>) attributes {dimension_semantics = [#tpu.dimension_semantics<parallel>, #tpu.dimension_semantics<arbitrary>], iteration_bounds = array<i64: 2, 2>, scalar_prefetch = 0 : i64, scratch_operands = 2 : i64, tpu.core_type = #tpu.core_type<tc>, window_params = [{transform_indices = @transform_0, window_bounds = array<i64: 1, 8, 32>}, {transform_indices = @transform_1, window_bounds = array<i64: 1, 1, 8>}, {pipeline_mode = #tpu.pipeline_mode<synchronous>, transform_indices = @transform_2, window_bounds = array<i64: 1, 32>}, {pipeline_mode = #tpu.pipeline_mode<synchronous>, transform_indices = @transform_3, window_bounds = array<i64: 1, 32>}, {transform_indices = @transform_4, window_bounds = array<i64: 1, 32, 96>}, {transform_indices = @transform_5, window_bounds = array<i64: 1, 1, 96>}, {transform_indices = @transform_6, window_bounds = array<i64: 1, 32, 32>}, {transform_indices = @transform_7, window_bounds = array<i64: 1, 1, 32>}, {transform_indices = @transform_8, window_bounds = array<i64: 1, 1, 32>}, {transform_indices = @transform_9, window_bounds = array<i64: 1, 1, 32>}, {transform_indices = @transform_10, window_bounds = array<i64: 1, 32, 64>}, {transform_indices = @transform_11, window_bounds = array<i64: 1, 1, 64>}, {transform_indices = @transform_12, window_bounds = array<i64: 1, 64, 32>}, {transform_indices = @transform_13, window_bounds = array<i64: 1, 1, 32>}, {transform_indices = @transform_14, window_bounds = array<i64: 1, 1, 32>}, {transform_indices = @transform_15, window_bounds = array<i64: 1, 1, 32>}, {pipeline_mode = #tpu.pipeline_mode<synchronous>, transform_indices = @transform_16, window_bounds = array<i64: 32, 32>}, {pipeline_mode = #tpu.pipeline_mode<synchronous>, transform_indices = @transform_17, window_bounds = array<i64: 1, 32>}, {pipeline_mode = #tpu.pipeline_mode<synchronous>, transform_indices = @transform_18, window_bounds = array<i64: 1, 32>}, {pipeline_mode = #tpu.pipeline_mode<synchronous>, transform_indices = @transform_19, window_bounds = array<i64: 1, 1>}, {transform_indices = @transform_20, window_bounds = array<i64: 1, 1, 1>}]} {
    %c0_i32 = arith.constant 0 : i32
    %0 = arith.cmpi eq, %arg1, %c0_i32 : i32
    %1 = arith.extui %0 : i1 to i32
    %c0_i32_0 = arith.constant 0 : i32
    %2 = arith.cmpi ne, %1, %c0_i32_0 : i32
    scf.if %2 {
      %c0_88 = arith.constant 0 : index
      %c0_89 = arith.constant 0 : index
      %c0_90 = arith.constant 0 : index
      %210 = vector.load %arg2[%c0_88, %c0_89, %c0_90] : memref<1x8x32xf32, #tpu.memory_space<vmem>>, vector<1x8x32xf32>
      %211 = vector.shape_cast %210 : vector<1x8x32xf32> to vector<8x32xf32>
      %c0_91 = arith.constant 0 : index
      %c0_92 = arith.constant 0 : index
      %212 = vector.load %arg4[%c0_91, %c0_92] : memref<1x32xf32, #tpu.memory_space<vmem>>, vector<1x32xf32>
      %c0_93 = arith.constant 0 : index
      %c0_94 = arith.constant 0 : index
      %213 = vector.load %arg5[%c0_93, %c0_94] : memref<1x32xf32, #tpu.memory_space<vmem>>, vector<1x32xf32>
      %cst_95 = arith.constant dense<0.000000e+00> : vector<8xf32>
      %214 = vector.multi_reduction <add>, %211, %cst_95 [1] : vector<8x32xf32> to vector<8xf32>
      %215 = vector.shape_cast %214 : vector<8xf32> to vector<8x1xf32>
      %cst_96 = arith.constant 3.200000e+01 : f32
      %216 = vector.broadcast %cst_96 : f32 to vector<8x1xf32>
      %217 = arith.divf %215, %216 : vector<8x1xf32>
      %218 = vector.broadcast %217 : vector<8x1xf32> to vector<8x32xf32>
      %219 = arith.subf %211, %218 : vector<8x32xf32>
      %220 = vector.broadcast %217 : vector<8x1xf32> to vector<8x32xf32>
      %221 = arith.subf %211, %220 : vector<8x32xf32>
      %222 = arith.mulf %219, %221 : vector<8x32xf32>
      %cst_97 = arith.constant dense<0.000000e+00> : vector<8xf32>
      %223 = vector.multi_reduction <add>, %222, %cst_97 [1] : vector<8x32xf32> to vector<8xf32>
      %224 = vector.shape_cast %223 : vector<8xf32> to vector<8x1xf32>
      %cst_98 = arith.constant 3.200000e+01 : f32
      %225 = vector.broadcast %cst_98 : f32 to vector<8x1xf32>
      %226 = arith.divf %224, %225 : vector<8x1xf32>
      %227 = vector.broadcast %217 : vector<8x1xf32> to vector<8x32xf32>
      %228 = arith.subf %211, %227 : vector<8x32xf32>
      %cst_99 = arith.constant 9.99999996E-13 : f32
      %229 = vector.broadcast %cst_99 : f32 to vector<8x1xf32>
      %230 = arith.addf %226, %229 : vector<8x1xf32>
      %231 = math.rsqrt %230 : vector<8x1xf32>
      %232 = vector.broadcast %231 : vector<8x1xf32> to vector<8x32xf32>
      %233 = arith.mulf %228, %232 : vector<8x32xf32>
      %234 = vector.broadcast %212 : vector<1x32xf32> to vector<8x32xf32>
      %235 = arith.mulf %233, %234 : vector<8x32xf32>
      %236 = vector.broadcast %213 : vector<1x32xf32> to vector<8x32xf32>
      %237 = arith.addf %235, %236 : vector<8x32xf32>
      %c0_100 = arith.constant 0 : index
      %c0_101 = arith.constant 0 : index
      %238 = vector.load %arg23[%c0_100, %c0_101] : memref<8x32xf32, #tpu.memory_space<vmem>>, vector<8x32xf32>
      tpu.vector_store %arg23[%c0_100, %c0_101], %237 {strides = array<i32>} : memref<8x32xf32, #tpu.memory_space<vmem>>, vector<8x32xf32>,
    } else {
    }
    %c0 = arith.constant 0 : index
    %c0_1 = arith.constant 0 : index
    %3 = vector.load %arg23[%c0, %c0_1] : memref<8x32xf32, #tpu.memory_space<vmem>>, vector<8x32xf32>
    %c0_2 = arith.constant 0 : index
    %c0_3 = arith.constant 0 : index
    %c0_4 = arith.constant 0 : index
    %4 = vector.load %arg3[%c0_2, %c0_3, %c0_4] : memref<1x1x8xf32, #tpu.memory_space<vmem>>, vector<1x1x8xf32>
    %5 = vector.shape_cast %4 : vector<1x1x8xf32> to vector<1x8xf32>
    %6 = arith.truncf %3 : vector<8x32xf32> to vector<8x32xbf16>
    %c0_5 = arith.constant 0 : index
    %c0_6 = arith.constant 0 : index
    %c0_7 = arith.constant 0 : index
    %7 = vector.load %arg6[%c0_5, %c0_6, %c0_7] : memref<1x32x96xbf16, #tpu.memory_space<vmem>>, vector<1x32x96xbf16>
    %8 = vector.shape_cast %7 : vector<1x32x96xbf16> to vector<32x96xbf16>
    %cst = arith.constant dense<0.000000e+00> : vector<8x96xf32>
    %9 = tpu.matmul %6, %8, %cst {dimension_numbers = #tpu.dot_dimension_numbers<[1], [0], [0], [1], [0, 0, 1, 1], [], []>} : vector<8x32xbf16>, vector<32x96xbf16>, vector<8x96xf32> -> vector<8x96xf32>
    %c0_8 = arith.constant 0 : index
    %c0_9 = arith.constant 0 : index
    %c0_10 = arith.constant 0 : index
    %10 = vector.load %arg7[%c0_8, %c0_9, %c0_10] : memref<1x1x96xf32, #tpu.memory_space<vmem>>, vector<1x1x96xf32>
    %11 = vector.shape_cast %10 : vector<1x1x96xf32> to vector<1x96xf32>
    %12 = vector.broadcast %11 : vector<1x96xf32> to vector<8x96xf32>
    %13 = arith.addf %9, %12 : vector<8x96xf32>
    %14 = vector.extract_strided_slice %13 {offsets = [0, 0], sizes = [8, 8], strides = [1, 1]} : vector<8x96xf32> to vector<8x8xf32>
    %cst_11 = arith.constant 0.353553385 : f32
    %15 = vector.broadcast %cst_11 : f32 to vector<8x8xf32>
    %16 = arith.mulf %14, %15 : vector<8x8xf32>
    %17 = arith.truncf %16 : vector<8x8xf32> to vector<8x8xbf16>
    %18 = vector.extract_strided_slice %13 {offsets = [0, 32], sizes = [8, 8], strides = [1, 1]} : vector<8x96xf32> to vector<8x8xf32>
    %19 = arith.truncf %18 : vector<8x8xf32> to vector<8x8xbf16>
    %20 = vector.extract_strided_slice %13 {offsets = [0, 64], sizes = [8, 8], strides = [1, 1]} : vector<8x96xf32> to vector<8x8xf32>
    %21 = arith.truncf %20 : vector<8x8xf32> to vector<8x8xbf16>
    %cst_12 = arith.constant dense<0.000000e+00> : vector<8x8xf32>
    %22 = tpu.matmul %17, %19, %cst_12 {dimension_numbers = #tpu.dot_dimension_numbers<[1], [1], [0], [0], [0, 0, 1, 0], [], []>} : vector<8x8xbf16>, vector<8x8xbf16>, vector<8x8xf32> -> vector<8x8xf32>
    %23 = vector.broadcast %5 : vector<1x8xf32> to vector<8x8xf32>
    %24 = arith.addf %22, %23 : vector<8x8xf32>
    %cst_13 = arith.constant dense<0xFF800000> : vector<8xf32>
    %25 = vector.multi_reduction <maximumf>, %24, %cst_13 [1] : vector<8x8xf32> to vector<8xf32>
    %26 = vector.shape_cast %25 : vector<8xf32> to vector<8x1xf32>
    %27 = vector.broadcast %26 : vector<8x1xf32> to vector<8x8xf32>
    %28 = arith.subf %24, %27 : vector<8x8xf32>
    %29 = math.exp %28 : vector<8x8xf32>
    %cst_14 = arith.constant dense<0.000000e+00> : vector<8xf32>
    %30 = vector.multi_reduction <add>, %29, %cst_14 [1] : vector<8x8xf32> to vector<8xf32>
    %31 = vector.shape_cast %30 : vector<8xf32> to vector<8x1xf32>
    %32 = tpu.reciprocal %31 {approx = true} : vector<8x1xf32> -> vector<8x1xf32>
    %33 = vector.broadcast %32 : vector<8x1xf32> to vector<8x8xf32>
    %34 = arith.mulf %29, %33 : vector<8x8xf32>
    %35 = arith.truncf %34 : vector<8x8xf32> to vector<8x8xbf16>
    %cst_15 = arith.constant dense<0.000000e+00> : vector<8x8xf32>
    %36 = tpu.matmul %35, %21, %cst_15 {dimension_numbers = #tpu.dot_dimension_numbers<[1], [0], [0], [1], [0, 0, 1, 1], [], []>} : vector<8x8xbf16>, vector<8x8xbf16>, vector<8x8xf32> -> vector<8x8xf32>
    %c0_16 = arith.constant 0 : index
    %c0_17 = arith.constant 0 : index
    %37 = vector.load %arg24[%c0_16, %c0_17] : memref<8x32xf32, #tpu.memory_space<vmem>>, vector<8x8xf32>
    tpu.vector_store %arg24[%c0_16, %c0_17], %36 {strides = array<i32>} : memref<8x32xf32, #tpu.memory_space<vmem>>, vector<8x8xf32>,
    %38 = vector.extract_strided_slice %13 {offsets = [0, 8], sizes = [8, 8], strides = [1, 1]} : vector<8x96xf32> to vector<8x8xf32>
    %cst_18 = arith.constant 0.353553385 : f32
    %39 = vector.broadcast %cst_18 : f32 to vector<8x8xf32>
    %40 = arith.mulf %38, %39 : vector<8x8xf32>
    %41 = arith.truncf %40 : vector<8x8xf32> to vector<8x8xbf16>
    %42 = vector.extract_strided_slice %13 {offsets = [0, 40], sizes = [8, 8], strides = [1, 1]} : vector<8x96xf32> to vector<8x8xf32>
    %43 = arith.truncf %42 : vector<8x8xf32> to vector<8x8xbf16>
    %44 = vector.extract_strided_slice %13 {offsets = [0, 72], sizes = [8, 8], strides = [1, 1]} : vector<8x96xf32> to vector<8x8xf32>
    %45 = arith.truncf %44 : vector<8x8xf32> to vector<8x8xbf16>
    %cst_19 = arith.constant dense<0.000000e+00> : vector<8x8xf32>
    %46 = tpu.matmul %41, %43, %cst_19 {dimension_numbers = #tpu.dot_dimension_numbers<[1], [1], [0], [0], [0, 0, 1, 0], [], []>} : vector<8x8xbf16>, vector<8x8xbf16>, vector<8x8xf32> -> vector<8x8xf32>
    %47 = vector.broadcast %5 : vector<1x8xf32> to vector<8x8xf32>
    %48 = arith.addf %46, %47 : vector<8x8xf32>
    %cst_20 = arith.constant dense<0xFF800000> : vector<8xf32>
    %49 = vector.multi_reduction <maximumf>, %48, %cst_20 [1] : vector<8x8xf32> to vector<8xf32>
    %50 = vector.shape_cast %49 : vector<8xf32> to vector<8x1xf32>
    %51 = vector.broadcast %50 : vector<8x1xf32> to vector<8x8xf32>
    %52 = arith.subf %48, %51 : vector<8x8xf32>
    %53 = math.exp %52 : vector<8x8xf32>
    %cst_21 = arith.constant dense<0.000000e+00> : vector<8xf32>
    %54 = vector.multi_reduction <add>, %53, %cst_21 [1] : vector<8x8xf32> to vector<8xf32>
    %55 = vector.shape_cast %54 : vector<8xf32> to vector<8x1xf32>
    %56 = tpu.reciprocal %55 {approx = true} : vector<8x1xf32> -> vector<8x1xf32>
    %57 = vector.broadcast %56 : vector<8x1xf32> to vector<8x8xf32>
    %58 = arith.mulf %53, %57 : vector<8x8xf32>
    %59 = arith.truncf %58 : vector<8x8xf32> to vector<8x8xbf16>
    %cst_22 = arith.constant dense<0.000000e+00> : vector<8x8xf32>
    %60 = tpu.matmul %59, %45, %cst_22 {dimension_numbers = #tpu.dot_dimension_numbers<[1], [0], [0], [1], [0, 0, 1, 1], [], []>} : vector<8x8xbf16>, vector<8x8xbf16>, vector<8x8xf32> -> vector<8x8xf32>
    %c0_23 = arith.constant 0 : index
    %c8 = arith.constant 8 : index
    %61 = vector.load %arg24[%c0_23, %c8] : memref<8x32xf32, #tpu.memory_space<vmem>>, vector<8x8xf32>
    tpu.vector_store %arg24[%c0_23, %c8], %60 {strides = array<i32>} : memref<8x32xf32, #tpu.memory_space<vmem>>, vector<8x8xf32>,
    %62 = vector.extract_strided_slice %13 {offsets = [0, 16], sizes = [8, 8], strides = [1, 1]} : vector<8x96xf32> to vector<8x8xf32>
    %cst_24 = arith.constant 0.353553385 : f32
    %63 = vector.broadcast %cst_24 : f32 to vector<8x8xf32>
    %64 = arith.mulf %62, %63 : vector<8x8xf32>
    %65 = arith.truncf %64 : vector<8x8xf32> to vector<8x8xbf16>
    %66 = vector.extract_strided_slice %13 {offsets = [0, 48], sizes = [8, 8], strides = [1, 1]} : vector<8x96xf32> to vector<8x8xf32>
    %67 = arith.truncf %66 : vector<8x8xf32> to vector<8x8xbf16>
    %68 = vector.extract_strided_slice %13 {offsets = [0, 80], sizes = [8, 8], strides = [1, 1]} : vector<8x96xf32> to vector<8x8xf32>
    %69 = arith.truncf %68 : vector<8x8xf32> to vector<8x8xbf16>
    %cst_25 = arith.constant dense<0.000000e+00> : vector<8x8xf32>
    %70 = tpu.matmul %65, %67, %cst_25 {dimension_numbers = #tpu.dot_dimension_numbers<[1], [1], [0], [0], [0, 0, 1, 0], [], []>} : vector<8x8xbf16>, vector<8x8xbf16>, vector<8x8xf32> -> vector<8x8xf32>
    %71 = vector.broadcast %5 : vector<1x8xf32> to vector<8x8xf32>
    %72 = arith.addf %70, %71 : vector<8x8xf32>
    %cst_26 = arith.constant dense<0xFF800000> : vector<8xf32>
    %73 = vector.multi_reduction <maximumf>, %72, %cst_26 [1] : vector<8x8xf32> to vector<8xf32>
    %74 = vector.shape_cast %73 : vector<8xf32> to vector<8x1xf32>
    %75 = vector.broadcast %74 : vector<8x1xf32> to vector<8x8xf32>
    %76 = arith.subf %72, %75 : vector<8x8xf32>
    %77 = math.exp %76 : vector<8x8xf32>
    %cst_27 = arith.constant dense<0.000000e+00> : vector<8xf32>
    %78 = vector.multi_reduction <add>, %77, %cst_27 [1] : vector<8x8xf32> to vector<8xf32>
    %79 = vector.shape_cast %78 : vector<8xf32> to vector<8x1xf32>
    %80 = tpu.reciprocal %79 {approx = true} : vector<8x1xf32> -> vector<8x1xf32>
    %81 = vector.broadcast %80 : vector<8x1xf32> to vector<8x8xf32>
    %82 = arith.mulf %77, %81 : vector<8x8xf32>
    %83 = arith.truncf %82 : vector<8x8xf32> to vector<8x8xbf16>
    %cst_28 = arith.constant dense<0.000000e+00> : vector<8x8xf32>
    %84 = tpu.matmul %83, %69, %cst_28 {dimension_numbers = #tpu.dot_dimension_numbers<[1], [0], [0], [1], [0, 0, 1, 1], [], []>} : vector<8x8xbf16>, vector<8x8xbf16>, vector<8x8xf32> -> vector<8x8xf32>
    %c0_29 = arith.constant 0 : index
    %c16 = arith.constant 16 : index
    %85 = vector.load %arg24[%c0_29, %c16] : memref<8x32xf32, #tpu.memory_space<vmem>>, vector<8x8xf32>
    tpu.vector_store %arg24[%c0_29, %c16], %84 {strides = array<i32>} : memref<8x32xf32, #tpu.memory_space<vmem>>, vector<8x8xf32>,
    %86 = vector.extract_strided_slice %13 {offsets = [0, 24], sizes = [8, 8], strides = [1, 1]} : vector<8x96xf32> to vector<8x8xf32>
    %cst_30 = arith.constant 0.353553385 : f32
    %87 = vector.broadcast %cst_30 : f32 to vector<8x8xf32>
    %88 = arith.mulf %86, %87 : vector<8x8xf32>
    %89 = arith.truncf %88 : vector<8x8xf32> to vector<8x8xbf16>
    %90 = vector.extract_strided_slice %13 {offsets = [0, 56], sizes = [8, 8], strides = [1, 1]} : vector<8x96xf32> to vector<8x8xf32>
    %91 = arith.truncf %90 : vector<8x8xf32> to vector<8x8xbf16>
    %92 = vector.extract_strided_slice %13 {offsets = [0, 88], sizes = [8, 8], strides = [1, 1]} : vector<8x96xf32> to vector<8x8xf32>
    %93 = arith.truncf %92 : vector<8x8xf32> to vector<8x8xbf16>
    %cst_31 = arith.constant dense<0.000000e+00> : vector<8x8xf32>
    %94 = tpu.matmul %89, %91, %cst_31 {dimension_numbers = #tpu.dot_dimension_numbers<[1], [1], [0], [0], [0, 0, 1, 0], [], []>} : vector<8x8xbf16>, vector<8x8xbf16>, vector<8x8xf32> -> vector<8x8xf32>
    %95 = vector.broadcast %5 : vector<1x8xf32> to vector<8x8xf32>
    %96 = arith.addf %94, %95 : vector<8x8xf32>
    %cst_32 = arith.constant dense<0xFF800000> : vector<8xf32>
    %97 = vector.multi_reduction <maximumf>, %96, %cst_32 [1] : vector<8x8xf32> to vector<8xf32>
    %98 = vector.shape_cast %97 : vector<8xf32> to vector<8x1xf32>
    %99 = vector.broadcast %98 : vector<8x1xf32> to vector<8x8xf32>
    %100 = arith.subf %96, %99 : vector<8x8xf32>
    %101 = math.exp %100 : vector<8x8xf32>
    %cst_33 = arith.constant dense<0.000000e+00> : vector<8xf32>
    %102 = vector.multi_reduction <add>, %101, %cst_33 [1] : vector<8x8xf32> to vector<8xf32>
    %103 = vector.shape_cast %102 : vector<8xf32> to vector<8x1xf32>
    %104 = tpu.reciprocal %103 {approx = true} : vector<8x1xf32> -> vector<8x1xf32>
    %105 = vector.broadcast %104 : vector<8x1xf32> to vector<8x8xf32>
    %106 = arith.mulf %101, %105 : vector<8x8xf32>
    %107 = arith.truncf %106 : vector<8x8xf32> to vector<8x8xbf16>
    %cst_34 = arith.constant dense<0.000000e+00> : vector<8x8xf32>
    %108 = tpu.matmul %107, %93, %cst_34 {dimension_numbers = #tpu.dot_dimension_numbers<[1], [0], [0], [1], [0, 0, 1, 1], [], []>} : vector<8x8xbf16>, vector<8x8xbf16>, vector<8x8xf32> -> vector<8x8xf32>
    %c0_35 = arith.constant 0 : index
    %c24 = arith.constant 24 : index
    %109 = vector.load %arg24[%c0_35, %c24] : memref<8x32xf32, #tpu.memory_space<vmem>>, vector<8x8xf32>
    tpu.vector_store %arg24[%c0_35, %c24], %108 {strides = array<i32>} : memref<8x32xf32, #tpu.memory_space<vmem>>, vector<8x8xf32>,
    %c0_36 = arith.constant 0 : index
    %c0_37 = arith.constant 0 : index
    %110 = vector.load %arg24[%c0_36, %c0_37] : memref<8x32xf32, #tpu.memory_space<vmem>>, vector<8x32xf32>
    %111 = arith.truncf %110 : vector<8x32xf32> to vector<8x32xbf16>
    %c0_38 = arith.constant 0 : index
    %c0_39 = arith.constant 0 : index
    %c0_40 = arith.constant 0 : index
    %112 = vector.load %arg8[%c0_38, %c0_39, %c0_40] : memref<1x32x32xbf16, #tpu.memory_space<vmem>>, vector<1x32x32xbf16>
    %113 = vector.shape_cast %112 : vector<1x32x32xbf16> to vector<32x32xbf16>
    %cst_41 = arith.constant dense<0.000000e+00> : vector<8x32xf32>
    %114 = tpu.matmul %111, %113, %cst_41 {dimension_numbers = #tpu.dot_dimension_numbers<[1], [0], [0], [1], [0, 0, 1, 1], [], []>} : vector<8x32xbf16>, vector<32x32xbf16>, vector<8x32xf32> -> vector<8x32xf32>
    %c0_42 = arith.constant 0 : index
    %c0_43 = arith.constant 0 : index
    %c0_44 = arith.constant 0 : index
    %115 = vector.load %arg9[%c0_42, %c0_43, %c0_44] : memref<1x1x32xf32, #tpu.memory_space<vmem>>, vector<1x1x32xf32>
    %116 = vector.shape_cast %115 : vector<1x1x32xf32> to vector<1x32xf32>
    %117 = vector.broadcast %116 : vector<1x32xf32> to vector<8x32xf32>
    %118 = arith.addf %114, %117 : vector<8x32xf32>
    %119 = arith.addf %118, %3 : vector<8x32xf32>
    %c0_45 = arith.constant 0 : index
    %c0_46 = arith.constant 0 : index
    %c0_47 = arith.constant 0 : index
    %120 = vector.load %arg10[%c0_45, %c0_46, %c0_47] : memref<1x1x32xf32, #tpu.memory_space<vmem>>, vector<1x1x32xf32>
    %121 = vector.shape_cast %120 : vector<1x1x32xf32> to vector<1x32xf32>
    %c0_48 = arith.constant 0 : index
    %c0_49 = arith.constant 0 : index
    %c0_50 = arith.constant 0 : index
    %122 = vector.load %arg11[%c0_48, %c0_49, %c0_50] : memref<1x1x32xf32, #tpu.memory_space<vmem>>, vector<1x1x32xf32>
    %123 = vector.shape_cast %122 : vector<1x1x32xf32> to vector<1x32xf32>
    %cst_51 = arith.constant dense<0.000000e+00> : vector<8xf32>
    %124 = vector.multi_reduction <add>, %119, %cst_51 [1] : vector<8x32xf32> to vector<8xf32>
    %125 = vector.shape_cast %124 : vector<8xf32> to vector<8x1xf32>
    %cst_52 = arith.constant 3.200000e+01 : f32
    %126 = vector.broadcast %cst_52 : f32 to vector<8x1xf32>
    %127 = arith.divf %125, %126 : vector<8x1xf32>
    %128 = vector.broadcast %127 : vector<8x1xf32> to vector<8x32xf32>
    %129 = arith.subf %119, %128 : vector<8x32xf32>
    %130 = vector.broadcast %127 : vector<8x1xf32> to vector<8x32xf32>
    %131 = arith.subf %119, %130 : vector<8x32xf32>
    %132 = arith.mulf %129, %131 : vector<8x32xf32>
    %cst_53 = arith.constant dense<0.000000e+00> : vector<8xf32>
    %133 = vector.multi_reduction <add>, %132, %cst_53 [1] : vector<8x32xf32> to vector<8xf32>
    %134 = vector.shape_cast %133 : vector<8xf32> to vector<8x1xf32>
    %cst_54 = arith.constant 3.200000e+01 : f32
    %135 = vector.broadcast %cst_54 : f32 to vector<8x1xf32>
    %136 = arith.divf %134, %135 : vector<8x1xf32>
    %137 = vector.broadcast %127 : vector<8x1xf32> to vector<8x32xf32>
    %138 = arith.subf %119, %137 : vector<8x32xf32>
    %cst_55 = arith.constant 9.99999996E-13 : f32
    %139 = vector.broadcast %cst_55 : f32 to vector<8x1xf32>
    %140 = arith.addf %136, %139 : vector<8x1xf32>
    %141 = math.rsqrt %140 : vector<8x1xf32>
    %142 = vector.broadcast %141 : vector<8x1xf32> to vector<8x32xf32>
    %143 = arith.mulf %138, %142 : vector<8x32xf32>
    %144 = vector.broadcast %121 : vector<1x32xf32> to vector<8x32xf32>
    %145 = arith.mulf %143, %144 : vector<8x32xf32>
    %146 = vector.broadcast %123 : vector<1x32xf32> to vector<8x32xf32>
    %147 = arith.addf %145, %146 : vector<8x32xf32>
    %148 = arith.truncf %147 : vector<8x32xf32> to vector<8x32xbf16>
    %c0_56 = arith.constant 0 : index
    %c0_57 = arith.constant 0 : index
    %c0_58 = arith.constant 0 : index
    %149 = vector.load %arg12[%c0_56, %c0_57, %c0_58] : memref<1x32x64xbf16, #tpu.memory_space<vmem>>, vector<1x32x64xbf16>
    %150 = vector.shape_cast %149 : vector<1x32x64xbf16> to vector<32x64xbf16>
    %cst_59 = arith.constant dense<0.000000e+00> : vector<8x64xf32>
    %151 = tpu.matmul %148, %150, %cst_59 {dimension_numbers = #tpu.dot_dimension_numbers<[1], [0], [0], [1], [0, 0, 1, 1], [], []>} : vector<8x32xbf16>, vector<32x64xbf16>, vector<8x64xf32> -> vector<8x64xf32>
    %c0_60 = arith.constant 0 : index
    %c0_61 = arith.constant 0 : index
    %c0_62 = arith.constant 0 : index
    %152 = vector.load %arg13[%c0_60, %c0_61, %c0_62] : memref<1x1x64xf32, #tpu.memory_space<vmem>>, vector<1x1x64xf32>
    %153 = vector.shape_cast %152 : vector<1x1x64xf32> to vector<1x64xf32>
    %154 = vector.broadcast %153 : vector<1x64xf32> to vector<8x64xf32>
    %155 = arith.addf %151, %154 : vector<8x64xf32>
    %cst_63 = arith.constant 5.000000e-01 : f32
    %156 = vector.broadcast %cst_63 : f32 to vector<8x64xf32>
    %157 = arith.mulf %156, %155 : vector<8x64xf32>
    %cst_64 = arith.constant 4.471500e-02 : f32
    %158 = vector.broadcast %cst_64 : f32 to vector<8x64xf32>
    %159 = arith.mulf %158, %155 : vector<8x64xf32>
    %160 = arith.mulf %159, %155 : vector<8x64xf32>
    %161 = arith.mulf %160, %155 : vector<8x64xf32>
    %162 = arith.addf %155, %161 : vector<8x64xf32>
    %cst_65 = arith.constant 0.797884583 : f32
    %163 = vector.broadcast %cst_65 : f32 to vector<8x64xf32>
    %164 = arith.mulf %163, %162 : vector<8x64xf32>
    %165 = math.tanh %164 : vector<8x64xf32>
    %cst_66 = arith.constant 1.000000e+00 : f32
    %166 = vector.broadcast %cst_66 : f32 to vector<8x64xf32>
    %167 = arith.addf %166, %165 : vector<8x64xf32>
    %168 = arith.mulf %157, %167 : vector<8x64xf32>
    %169 = arith.truncf %168 : vector<8x64xf32> to vector<8x64xbf16>
    %c0_67 = arith.constant 0 : index
    %c0_68 = arith.constant 0 : index
    %c0_69 = arith.constant 0 : index
    %170 = vector.load %arg14[%c0_67, %c0_68, %c0_69] : memref<1x64x32xbf16, #tpu.memory_space<vmem>>, vector<1x64x32xbf16>
    %171 = vector.shape_cast %170 : vector<1x64x32xbf16> to vector<64x32xbf16>
    %cst_70 = arith.constant dense<0.000000e+00> : vector<8x32xf32>
    %172 = tpu.matmul %169, %171, %cst_70 {dimension_numbers = #tpu.dot_dimension_numbers<[1], [0], [0], [1], [0, 0, 1, 1], [], []>} : vector<8x64xbf16>, vector<64x32xbf16>, vector<8x32xf32> -> vector<8x32xf32>
    %c0_71 = arith.constant 0 : index
    %c0_72 = arith.constant 0 : index
    %c0_73 = arith.constant 0 : index
    %173 = vector.load %arg15[%c0_71, %c0_72, %c0_73] : memref<1x1x32xf32, #tpu.memory_space<vmem>>, vector<1x1x32xf32>
    %174 = vector.shape_cast %173 : vector<1x1x32xf32> to vector<1x32xf32>
    %175 = vector.broadcast %174 : vector<1x32xf32> to vector<8x32xf32>
    %176 = arith.addf %172, %175 : vector<8x32xf32>
    %177 = arith.addf %176, %147 : vector<8x32xf32>
    %c0_74 = arith.constant 0 : index
    %c0_75 = arith.constant 0 : index
    %c0_76 = arith.constant 0 : index
    %178 = vector.load %arg16[%c0_74, %c0_75, %c0_76] : memref<1x1x32xf32, #tpu.memory_space<vmem>>, vector<1x1x32xf32>
    %179 = vector.shape_cast %178 : vector<1x1x32xf32> to vector<1x32xf32>
    %c0_77 = arith.constant 0 : index
    %c0_78 = arith.constant 0 : index
    %c0_79 = arith.constant 0 : index
    %180 = vector.load %arg17[%c0_77, %c0_78, %c0_79] : memref<1x1x32xf32, #tpu.memory_space<vmem>>, vector<1x1x32xf32>
    %181 = vector.shape_cast %180 : vector<1x1x32xf32> to vector<1x32xf32>
    %cst_80 = arith.constant dense<0.000000e+00> : vector<8xf32>
    %182 = vector.multi_reduction <add>, %177, %cst_80 [1] : vector<8x32xf32> to vector<8xf32>
    %183 = vector.shape_cast %182 : vector<8xf32> to vector<8x1xf32>
    %cst_81 = arith.constant 3.200000e+01 : f32
    %184 = vector.broadcast %cst_81 : f32 to vector<8x1xf32>
    %185 = arith.divf %183, %184 : vector<8x1xf32>
    %186 = vector.broadcast %185 : vector<8x1xf32> to vector<8x32xf32>
    %187 = arith.subf %177, %186 : vector<8x32xf32>
    %188 = vector.broadcast %185 : vector<8x1xf32> to vector<8x32xf32>
    %189 = arith.subf %177, %188 : vector<8x32xf32>
    %190 = arith.mulf %187, %189 : vector<8x32xf32>
    %cst_82 = arith.constant dense<0.000000e+00> : vector<8xf32>
    %191 = vector.multi_reduction <add>, %190, %cst_82 [1] : vector<8x32xf32> to vector<8xf32>
    %192 = vector.shape_cast %191 : vector<8xf32> to vector<8x1xf32>
    %cst_83 = arith.constant 3.200000e+01 : f32
    %193 = vector.broadcast %cst_83 : f32 to vector<8x1xf32>
    %194 = arith.divf %192, %193 : vector<8x1xf32>
    %195 = vector.broadcast %185 : vector<8x1xf32> to vector<8x32xf32>
    %196 = arith.subf %177, %195 : vector<8x32xf32>
    %cst_84 = arith.constant 9.99999996E-13 : f32
    %197 = vector.broadcast %cst_84 : f32 to vector<8x1xf32>
    %198 = arith.addf %194, %197 : vector<8x1xf32>
    %199 = math.rsqrt %198 : vector<8x1xf32>
    %200 = vector.broadcast %199 : vector<8x1xf32> to vector<8x32xf32>
    %201 = arith.mulf %196, %200 : vector<8x32xf32>
    %202 = vector.broadcast %179 : vector<1x32xf32> to vector<8x32xf32>
    %203 = arith.mulf %201, %202 : vector<8x32xf32>
    %204 = vector.broadcast %181 : vector<1x32xf32> to vector<8x32xf32>
    %205 = arith.addf %203, %204 : vector<8x32xf32>
    %c0_85 = arith.constant 0 : index
    %c0_86 = arith.constant 0 : index
    %206 = vector.load %arg23[%c0_85, %c0_86] : memref<8x32xf32, #tpu.memory_space<vmem>>, vector<8x32xf32>
    tpu.vector_store %arg23[%c0_85, %c0_86], %205 {strides = array<i32>} : memref<8x32xf32, #tpu.memory_space<vmem>>, vector<8x32xf32>,
    %c1_i32 = arith.constant 1 : i32
    %207 = arith.cmpi eq, %arg1, %c1_i32 : i32
    %208 = arith.extui %207 : i1 to i32
    %c0_i32_87 = arith.constant 0 : i32
    %209 = arith.cmpi ne, %208, %c0_i32_87 : i32
    scf.if %209 {
      %210 = vector.extract_strided_slice %205 {offsets = [0, 0], sizes = [1, 32], strides = [1, 1]} : vector<8x32xf32> to vector<1x32xf32>
      %211 = arith.truncf %210 : vector<1x32xf32> to vector<1x32xbf16>
      %c0_88 = arith.constant 0 : index
      %c0_89 = arith.constant 0 : index
      %212 = vector.load %arg18[%c0_88, %c0_89] : memref<32x32xbf16, #tpu.memory_space<vmem>>, vector<32x32xbf16>
      %cst_90 = arith.constant dense<0.000000e+00> : vector<1x32xf32>
      %213 = tpu.matmul %211, %212, %cst_90 {dimension_numbers = #tpu.dot_dimension_numbers<[1], [0], [0], [1], [0, 0, 1, 1], [], []>} : vector<1x32xbf16>, vector<32x32xbf16>, vector<1x32xf32> -> vector<1x32xf32>
      %c0_91 = arith.constant 0 : index
      %c0_92 = arith.constant 0 : index
      %214 = vector.load %arg19[%c0_91, %c0_92] : memref<1x32xf32, #tpu.memory_space<vmem>>, vector<1x32xf32>
      %215 = arith.addf %213, %214 : vector<1x32xf32>
      %216 = math.tanh %215 : vector<1x32xf32>
      %c0_93 = arith.constant 0 : index
      %c0_94 = arith.constant 0 : index
      %217 = vector.load %arg20[%c0_93, %c0_94] : memref<1x32xf32, #tpu.memory_space<vmem>>, vector<1x32xf32>
      %218 = arith.mulf %216, %217 : vector<1x32xf32>
      %cst_95 = arith.constant dense<0.000000e+00> : vector<1xf32>
      %219 = vector.multi_reduction <add>, %218, %cst_95 [1] : vector<1x32xf32> to vector<1xf32>
      %220 = vector.shape_cast %219 : vector<1xf32> to vector<1x1xf32>
      %c0_96 = arith.constant 0 : index
      %c0_97 = arith.constant 0 : index
      %221 = vector.load %arg21[%c0_96, %c0_97] : memref<1x1xf32, #tpu.memory_space<vmem>>, vector<1x1xf32>
      %222 = arith.addf %220, %221 : vector<1x1xf32>
      %c0_98 = arith.constant 0 : index
      %c0_99 = arith.constant 0 : index
      %c0_100 = arith.constant 0 : index
      %223 = vector.load %arg22[%c0_98, %c0_99, %c0_100] : memref<1x1x1xf32, #tpu.memory_space<vmem>>, vector<1x1x1xf32>
      %224 = vector.shape_cast %223 : vector<1x1x1xf32> to vector<1x1xf32>
      %225 = vector.shape_cast %222 : vector<1x1xf32> to vector<1x1x1xf32>
      tpu.vector_store %arg22[%c0_98, %c0_99, %c0_100], %225 {strides = array<i32>} : memref<1x1x1xf32, #tpu.memory_space<vmem>>, vector<1x1x1xf32>,
    } else {
    }
    return
  }
  func.func @transform_0(%arg0: i32, %arg1: i32) -> (i32, i32, i32) {
    %c0_i32 = arith.constant 0 : i32
    %c0_i32_0 = arith.constant 0 : i32
    %c0_i32_1 = arith.constant 0 : i32
    return %arg0, %c0_i32, %c0_i32_0 : i32, i32, i32
  }
  func.func @transform_1(%arg0: i32, %arg1: i32) -> (i32, i32, i32) {
    %c0_i32 = arith.constant 0 : i32
    %c0_i32_0 = arith.constant 0 : i32
    %c0_i32_1 = arith.constant 0 : i32
    return %arg0, %c0_i32, %c0_i32_0 : i32, i32, i32
  }
  func.func @transform_2(%arg0: i32, %arg1: i32) -> (i32, i32) {
    %c0_i32 = arith.constant 0 : i32
    %c0_i32_0 = arith.constant 0 : i32
    %c0_i32_1 = arith.constant 0 : i32
    return %c0_i32, %c0_i32_0 : i32, i32
  }
  func.func @transform_3(%arg0: i32, %arg1: i32) -> (i32, i32) {
    %c0_i32 = arith.constant 0 : i32
    %c0_i32_0 = arith.constant 0 : i32
    %c0_i32_1 = arith.constant 0 : i32
    return %c0_i32, %c0_i32_0 : i32, i32
  }
  func.func @transform_4(%arg0: i32, %arg1: i32) -> (i32, i32, i32) {
    %c0_i32 = arith.constant 0 : i32
    %c0_i32_0 = arith.constant 0 : i32
    %c0_i32_1 = arith.constant 0 : i32
    return %arg1, %c0_i32, %c0_i32_0 : i32, i32, i32
  }
  func.func @transform_5(%arg0: i32, %arg1: i32) -> (i32, i32, i32) {
    %c0_i32 = arith.constant 0 : i32
    %c0_i32_0 = arith.constant 0 : i32
    %c0_i32_1 = arith.constant 0 : i32
    return %arg1, %c0_i32, %c0_i32_0 : i32, i32, i32
  }
  func.func @transform_6(%arg0: i32, %arg1: i32) -> (i32, i32, i32) {
    %c0_i32 = arith.constant 0 : i32
    %c0_i32_0 = arith.constant 0 : i32
    %c0_i32_1 = arith.constant 0 : i32
    return %arg1, %c0_i32, %c0_i32_0 : i32, i32, i32
  }
  func.func @transform_7(%arg0: i32, %arg1: i32) -> (i32, i32, i32) {
    %c0_i32 = arith.constant 0 : i32
    %c0_i32_0 = arith.constant 0 : i32
    %c0_i32_1 = arith.constant 0 : i32
    return %arg1, %c0_i32, %c0_i32_0 : i32, i32, i32
  }
  func.func @transform_8(%arg0: i32, %arg1: i32) -> (i32, i32, i32) {
    %c0_i32 = arith.constant 0 : i32
    %c0_i32_0 = arith.constant 0 : i32
    %c0_i32_1 = arith.constant 0 : i32
    return %arg1, %c0_i32, %c0_i32_0 : i32, i32, i32
  }
  func.func @transform_9(%arg0: i32, %arg1: i32) -> (i32, i32, i32) {
    %c0_i32 = arith.constant 0 : i32
    %c0_i32_0 = arith.constant 0 : i32
    %c0_i32_1 = arith.constant 0 : i32
    return %arg1, %c0_i32, %c0_i32_0 : i32, i32, i32
  }
  func.func @transform_10(%arg0: i32, %arg1: i32) -> (i32, i32, i32) {
    %c0_i32 = arith.constant 0 : i32
    %c0_i32_0 = arith.constant 0 : i32
    %c0_i32_1 = arith.constant 0 : i32
    return %arg1, %c0_i32, %c0_i32_0 : i32, i32, i32
  }
  func.func @transform_11(%arg0: i32, %arg1: i32) -> (i32, i32, i32) {
    %c0_i32 = arith.constant 0 : i32
    %c0_i32_0 = arith.constant 0 : i32
    %c0_i32_1 = arith.constant 0 : i32
    return %arg1, %c0_i32, %c0_i32_0 : i32, i32, i32
  }
  func.func @transform_12(%arg0: i32, %arg1: i32) -> (i32, i32, i32) {
    %c0_i32 = arith.constant 0 : i32
    %c0_i32_0 = arith.constant 0 : i32
    %c0_i32_1 = arith.constant 0 : i32
    return %arg1, %c0_i32, %c0_i32_0 : i32, i32, i32
  }
  func.func @transform_13(%arg0: i32, %arg1: i32) -> (i32, i32, i32) {
    %c0_i32 = arith.constant 0 : i32
    %c0_i32_0 = arith.constant 0 : i32
    %c0_i32_1 = arith.constant 0 : i32
    return %arg1, %c0_i32, %c0_i32_0 : i32, i32, i32
  }
  func.func @transform_14(%arg0: i32, %arg1: i32) -> (i32, i32, i32) {
    %c0_i32 = arith.constant 0 : i32
    %c0_i32_0 = arith.constant 0 : i32
    %c0_i32_1 = arith.constant 0 : i32
    return %arg1, %c0_i32, %c0_i32_0 : i32, i32, i32
  }
  func.func @transform_15(%arg0: i32, %arg1: i32) -> (i32, i32, i32) {
    %c0_i32 = arith.constant 0 : i32
    %c0_i32_0 = arith.constant 0 : i32
    %c0_i32_1 = arith.constant 0 : i32
    return %arg1, %c0_i32, %c0_i32_0 : i32, i32, i32
  }
  func.func @transform_16(%arg0: i32, %arg1: i32) -> (i32, i32) {
    %c0_i32 = arith.constant 0 : i32
    %c0_i32_0 = arith.constant 0 : i32
    %c0_i32_1 = arith.constant 0 : i32
    return %c0_i32, %c0_i32_0 : i32, i32
  }
  func.func @transform_17(%arg0: i32, %arg1: i32) -> (i32, i32) {
    %c0_i32 = arith.constant 0 : i32
    %c0_i32_0 = arith.constant 0 : i32
    %c0_i32_1 = arith.constant 0 : i32
    return %c0_i32, %c0_i32_0 : i32, i32
  }
  func.func @transform_18(%arg0: i32, %arg1: i32) -> (i32, i32) {
    %c0_i32 = arith.constant 0 : i32
    %c0_i32_0 = arith.constant 0 : i32
    %c0_i32_1 = arith.constant 0 : i32
    return %c0_i32, %c0_i32_0 : i32, i32
  }
  func.func @transform_19(%arg0: i32, %arg1: i32) -> (i32, i32) {
    %c0_i32 = arith.constant 0 : i32
    %c0_i32_0 = arith.constant 0 : i32
    %c0_i32_1 = arith.constant 0 : i32
    return %c0_i32, %c0_i32_0 : i32, i32
  }
  func.func @transform_20(%arg0: i32, %arg1: i32) -> (i32, i32, i32) {
    %c0_i32 = arith.constant 0 : i32
    %c0_i32_0 = arith.constant 0 : i32
    %c0_i32_1 = arith.constant 0 : i32
    return %arg0, %c0_i32, %c0_i32_0 : i32, i32, i32
  }
}

</mosaic_0001>

<bundles_post_ra>
// kernel: tpu_custom_call.1
= control target key start
LH: loop header
LB: loop body
LE: loop exit
PB: predicated region body
PF: predicated region fallthrough
CT: control target
= control target key end

     0   :  { %s3724_s0 = inlined_call_operand.hbm [shape: f32[2,8,32], index: 0, kind: input, shape index: {}]   ;;  %s3725_s1 = inlined_call_operand.hbm [shape: f32[2,1,8], index: 1, kind: input, shape index: {}]   ;;  %s3726_s2 = inlined_call_operand.vmem [shape: f32[1,32], index: 2, kind: input, shape index: {}]   ;;  %s3727_s3 = inlined_call_operand.hbm [shape: f32[1,32], index: 3, kind: input, shape index: {}]   ;;  %s3728_s4 = inlined_call_operand.vmem [shape: bf16[2,32,96], index: 4, kind: input, shape index: {}]   ;;  %s3729_s5 = inlined_call_operand.hbm [shape: f32[2,1,96], index: 5, kind: input, shape index: {}]   ;;  %s3730_s6 = inlined_call_operand.vmem [shape: bf16[2,32,32], index: 6, kind: input, shape index: {}]   ;;  %s3731_s7 = inlined_call_operand.hbm [shape: f32[2,1,32], index: 7, kind: input, shape index: {}]   ;;  %s3732_s8 = inlined_call_operand.hbm [shape: f32[2,1,32], index: 8, kind: input, shape index: {}]   ;;  %s3733_s9 = inlined_call_operand.hbm [shape: f32[2,1,32], index: 9, kind: input, shape index: {}]   ;;  %s3734_s10 = inlined_call_operand.vmem [shape: bf16[2,32,64], index: 10, kind: input, shape index: {}]   ;;  %s3735_s11 = inlined_call_operand.hbm [shape: f32[2,1,64], index: 11, kind: input, shape index: {}]   ;;  %s3736_s12 = inlined_call_operand.vmem [shape: bf16[2,64,32], index: 12, kind: input, shape index: {}]   ;;  %s3737_s13 = inlined_call_operand.vmem [shape: f32[2,1,32], index: 13, kind: input, shape index: {}]   ;;  %s3738_s14 = inlined_call_operand.vmem [shape: f32[2,1,32], index: 14, kind: input, shape index: {}]   ;;  %s3739_s15 = inlined_call_operand.vmem [shape: f32[2,1,32], index: 15, kind: input, shape index: {}]   ;;  %s3740_s16 = inlined_call_operand.vmem [shape: bf16[32,32], index: 16, kind: input, shape index: {}]   ;;  %s3741_s17 = inlined_call_operand.vmem [shape: f32[1,32], index: 17, kind: input, shape index: {}]   ;;  %s3742_s18 = inlined_call_operand.vmem [shape: f32[1,32], index: 18, kind: input, shape index: {}]   ;;  %s3743_s19 = inlined_call_operand.<no memory space> [shape: f32[1,1], index: 19, kind: input, shape index: {}]   ;;  %s3744_s20 = inlined_call_operand.vmem [shape: f32[2,1,1], index: 20, kind: output, shape index: {}]  }
   0x1   :  { %3774 = sst [smem:[#allocation36_spill]] %s3724_s0  ;;  %v25_v0 = vstv %s3743_s19 }
   0x2   :  { %3775 = sst [smem:[#allocation37_spill]] %s3725_s1  ;;  %26 = vst [vmem:[#allocation4] sm:$0x1] %v25_v0 }
   0x3   :  { %3776 = sst [smem:[#allocation38_spill]] %s3726_s2 }
   0x4   :  { %3777 = sst [smem:[#allocation39_spill]] %s3727_s3 }
   0x5   :  { %3778 = sst [smem:[#allocation40_spill]] %s3728_s4 }
   0x6   :  { %3779 = sst [smem:[#allocation41_spill]] %s3729_s5 }
   0x7   :  { %3780 = sst [smem:[#allocation42_spill]] %s3730_s6 }
   0x8   :  { %3781 = sst [smem:[#allocation43_spill]] %s3731_s7 }
   0x9   :  { %3782 = sst [smem:[#allocation44_spill]] %s3732_s8 }
   0xa   :  { %3783 = sst [smem:[#allocation45_spill]] %s3733_s9 }
   0xb   :  { %3784 = sst [smem:[#allocation46_spill]] %s3734_s10 }
   0xc   :  { %3785 = sst [smem:[#allocation47_spill]] %s3735_s11 }
   0xd   :  { %3786 = sst [smem:[#allocation48_spill]] %s3736_s12 }
   0xe   :  { %3787 = sst [smem:[#allocation49_spill]] %s3737_s13 }
   0xf   :  { %3788 = sst [smem:[#allocation50_spill]] %s3738_s14 }
  0x10   :  { %3789 = sst [smem:[#allocation51_spill]] %s3739_s15 }
  0x11   :  { %3790 = sst [smem:[#allocation52_spill]] %s3740_s16 }
  0x12   :  { %3791 = sst [smem:[#allocation53_spill]] %s3741_s17 }
  0x13   :  { %3792 = sst [smem:[#allocation54_spill]] %s3742_s18 }
  0x14   :  { %3793 = sst [smem:[#allocation55_spill]] %s3744_s20 }
  0x15   :  { %27 = vsyncpa [#allocation6], 0 }
  0x16   :  { %29 = vsyncpa [#allocation6 + $0x1], 0 }
  0x17   :  { %30 = vsyncpa [#allocation8], 0 }
  0x18   :  { %32 = vsyncpa [#allocation8 + $0x1], 0 }
  0x19   :  { %33 = vsyncpa [#allocation11], 0 }
  0x1a   :  { %35 = vsyncpa [#allocation11 + $0x1], 0 }
  0x1b   :  { %36 = vsyncpa [#allocation14], 0 }
  0x1c   :  { %38 = vsyncpa [#allocation14 + $0x1], 0 }
  0x1d   :  { %39 = vsyncpa [#allocation17], 0 }
  0x1e   :  { %41 = vsyncpa [#allocation17 + $0x1], 0  ;;  %s3070_s23 = smov 0   ;;  %s3072_s24 = smov 0  }
  0x1f   :  { %s3074_s2 = smov 0   ;;  %s3076_s25 = smov 0  }
  0x20   :  { %s3078_s19 = smov 0   ;;  %s3080_s3 = smov 0  }
  0x21   :  { %s3082_s26 = smov 0   ;;  %s3084_s27 = smov 0  }
  0x22   :  { %s3086_s28 = smov 0   ;;  %s3088_s4 = smov 0  }
  0x23   :  { %s3090_s29 = smov 0  }
  0x24 LB: > { %3794 = sst [smem:[#allocation24_spill]] %s2898_s24  ;;  %s3748_s30 = sadd.s32 4294967295, %s2934_s29   ;;  %s2934_s29 = sphi %s3090_s29, %s47_s29   ;;  %s2930_s4 = sphi %s3088_s4, %s3880_s4   ;;  %s2926_s28 = sphi %s3086_s28, %s3879_s28   ;;  %s2922_s27 = sphi %s3084_s27, %s3878_s27   ;;  %s2918_s26 = sphi %s3082_s26, %s3877_s26   ;;  %s2914_s3 = sphi %s3080_s3, %s3876_s3   ;;  %s2910_s19 = sphi %s3078_s19, %s3875_s19   ;;  %s2906_s25 = sphi %s3076_s25, %s3874_s25   ;;  %s2902_s2 = sphi %s3074_s2, %s3873_s2   ;;  %s2898_s24 = sphi %s3072_s24, %s3872_s24   ;;  %s2894_s23 = sphi %s3070_s23, %s3871_s23  }
  0x25   : > { %3795 = sst [smem:[#allocation25_spill]] %s2902_s2  ;;  %p3751_p0 = scmp.eq.s32.totalorder %s2934_s29, 0 }
  0x26   : > { %3796 = sst [smem:[#allocation26_spill]] %s2910_s19  ;;  %p79_p1 = scmp.ne.s32.totalorder %s2910_s19, %s2906_s25 }
  0x27   : > { %3797 = sst [smem:[#allocation27_spill]] %s2914_s3  ;;  %p3126_p2 = scmp.eq.s32.totalorder %s3748_s30, 0 }
  0x28   : > { %3798 = sst [smem:[#allocation28_spill]] %s2918_s26  ;;  %p193_p3 = scmp.ne.s32.totalorder %s2902_s2, %s2898_s24 }
  0x29   : > { %3799 = sst [smem:[#allocation29_spill]] %s2922_s27  ;;  %p199_p4 = scmp.ne.s32.totalorder %s2898_s24, %s2894_s23 }
  0x2a   : > { %3800 = sst [smem:[#allocation30_spill]] %s2926_s28  ;;  %p3135_p5 = por %p3126_p2, %p79_p1 }
  0x2b   : > { %3801 = sst [smem:[#allocation31_spill]] %s2930_s4  ;;  %p2203_p6 = scmp.ge.s32.totalorder %s2934_s29, 1 }
  0x2c   : > { %s3802_s0 = scalar_select %p3126_p2, 1, 0 }
  0x2d   : > { %s3803_s21 = scalar_select %p3135_p5, 1, 0 }
  0x2e   : > { %p3142_p7 = por %p193_p3, %p3751_p0  ;;  %p3148_p8 = por %p199_p4, %p3126_p2 }
  0x2f   : > { %p580_p9 = scmp.lt.s32.totalorder %s2934_s29, 5  ;;  %s2936_s25 = smov [#allocation9]  }
  0x30   : > { %s3804_s1 = scalar_select %p3142_p7, 1, 0 }
  0x31   : > { %s3805_s22 = scalar_select %p3148_p8, 1, 0 }
  0x32   : > { %p3153_p10 = pnand %p2203_p6, %p580_p9  ;;  %s596_s30 = sshll.u32 %s2936_s25, 4  ;;  %s597_s30 = int_to_ptr.vmem [resolvable:$true] %s596_s30 }
  0x33   : > { %s56_s18 = sadd.s32 1, %s2926_s28  ;;  %s3173_s15 = sand.u32 1, %s2934_s29  }
  0x34   : > { %s3806_s23 = scalar_select %p3153_p10, 1, 0 }
  0x35   : > { %p2412_p11 = pneg %p3153_p10  ;;  %p3167_p13 = scmp.ge.s32.totalorder %s56_s18, 2 }
  0x36   : > { %s3809_s13 = sld [smem:[#allocation39_spill]] }
  0x37   : > { %p3163_p12 = pnand %p2412_p11, %p3126_p2 }
  0x38   : > { %s3808_s20 = scalar_select %p3167_p13, 1, 0 }
  0x39   : > { %p2588_p4 = pneg %p3163_p12 }
  0x3c   : > { %s2586_s12 = scalar_lea.hbm %s3809_s13, 16 }
  0x3d   : > { %p2587_p3 = scmp.ne.s32.totalorder %s3809_s13, %s2586_s12  ;;  %p2593_p11 = scmp.lt.u32.totalorder %s2586_s12, %s3809_s13 }
  0x3f   : > { %p2589_p6 = pnand %p2588_p4, %p2587_p3 }
  0x41   : > { %p2590_p9 = pneg %p2589_p6 }
  0x43   : > { %p2595_p0 = pnand %p2593_p11, %p2590_p9 }
  0x45   : > { %2598 = shalt.err (!%p2595_p0)
}
  0x46   : > { %s2599_s26 = scalar_lea.vmem %s597_s30, 16  ;;  %s2606_s14 = scalar_lea.vmem %s597_s30, 32 }
  0x47   : > { %p2600_p1 = scmp.ne.s32.totalorder %s597_s30, %s2599_s26  ;;  %p2607_p5 = scmp.lt.s32.totalorder %s597_s30, %s597_s30 }
  0x48   : > { %p2608_p10 = scmp.lt.s32.totalorder %s2606_s14, %s2599_s26 }
  0x49   : > { %p2602_p8 = pnand %p2600_p1, %p2588_p4 }
  0x4a   : > { %p2609_p7 = por %p2608_p10, %p2607_p5 }
  0x4b   : > { %p2603_p2 = pneg %p2602_p8 }
  0x4d   : > { %p2610_p13 = pnand %p2609_p7, %p2603_p2 }
  0x4f   : > { %2613 = shalt.err (!%p2610_p13)
}
  0x50   : > { %2415 = dma.hbm_to_vmem [thread:$0]  (!%p3163_p12), %s3809_s13, 16, %s597_s30, [#allocation8]  }
  0x51   : > { %p3810_p0 = scmp.ne.s32.totalorder %s3808_s20, 0  ;;  %s3196_s12 = sand.u32 1, %s2902_s2  }
  0x52   : > { %s3199_s16 = sshll.u32 %s2926_s28, 4  ;;  %s3812_s5 = sld [smem:[#allocation41_spill]] }
  0x53   : > { %s3882_s18 = smov (%p3810_p0, %s56_s18), 0  ;;  %s665_s30 = scalar_lea.vmem [#allocation10], %s3196_s12 }
  0x54   : > { %3811 = sst [smem:[#allocation32_spill]] %s3882_s18  ;;  %s183_s17 = ssub.s32 %s2926_s28, %s3882_s18 }
  0x55   : > { %p184_p2 = scmp.eq.s32.totalorder %s183_s17, 0  ;;  %s672_s14 = sshll.u32 %s665_s30, 4  ;;  %s3223_s14 = int_to_ptr.vmem [resolvable:$true] %s672_s14 }
  0x56   : > { %p3813_p5 = scmp.ne.s32.totalorder %s3804_s1, 0  ;;  %p3814_p7 = scmp.lt.s32.totalorder %s2934_s29, 4 }
  0x57   : > { %s3816_s10 = sadd.s32 1, %s2902_s2 }
  0x58   : > { %s3207_s25 = scalar_lea.hbm %s3812_s5, %s3199_s16  ;;  %p3214_p8 = pnand %p3814_p7, %p3813_p5 }
  0x59   : > { %s3221_s17 = scalar_select %p184_p2, %s2902_s2, %s3816_s10  }
  0x5a   : > { %s3815_s6 = scalar_select %p3214_p8, 1, 0 }
  0x5b   : > { %3817 = sst [smem:[#allocation33_spill]] %s3221_s17  ;;  %s2614_s27 = scalar_lea.hbm %s3207_s25, 16 }
  0x5c   : > { %p2615_p10 = scmp.ne.s32.totalorder %s3207_s25, %s2614_s27  ;;  %p3230_p12 = pneg %p3214_p8 }
  0x5d   : > { %s2619_s18 = scalar_lea.hbm %s3812_s5, 32  ;;  %p2620_p3 = scmp.lt.u32.totalorder %s3207_s25, %s3812_s5 }
  0x5e   : > { %s3818_s13 = scalar_select %p3230_p12, 1, 0 }
  0x5f   : > { %p2617_p13 = pnand %p3230_p12, %p2615_p10  ;;  %p2621_p4 = scmp.lt.u32.totalorder %s2619_s18, %s2614_s27 }
  0x60   : > { %p2623_p9 = scmp.lt.u32.totalorder %s2614_s27, %s3207_s25 }
  0x61   : > { %p2618_p1 = pneg %p2617_p13  ;;  %p2622_p6 = por %p2621_p4, %p2620_p3 }
  0x63   : > { %p2624_p11 = por %p2623_p9, %p2622_p6 }
  0x65   : > { %p2625_p2 = pnand %p2624_p11, %p2618_p1 }
  0x67   : > { %2628 = shalt.err (!%p2625_p2)
}
  0x68   : > { %s2629_s26 = scalar_lea.vmem %s3223_s14, 16  ;;  %s2937_s1 = smov [#allocation10]  }
  0x69   : > { %p2630_p5 = scmp.ne.s32.totalorder %s3223_s14, %s2629_s26  ;;  %s2634_s30 = sshll.u32 %s2937_s1, 4  ;;  %s2635_s30 = int_to_ptr.vmem [resolvable:$false] %s2634_s30 }
  0x6a   : > { %s2636_s28 = scalar_lea.vmem %s2635_s30, 32  ;;  %p2637_p13 = scmp.lt.s32.totalorder %s3223_s14, %s2635_s30 }
  0x6b   : > { %p2632_p7 = pnand %p2630_p5, %p3230_p12  ;;  %p2638_p0 = scmp.lt.s32.totalorder %s2636_s28, %s2629_s26 }
  0x6d   : > { %p2633_p10 = pneg %p2632_p7  ;;  %p2639_p3 = por %p2638_p0, %p2637_p13 }
  0x6f   : > { %p2640_p4 = pnand %p2639_p3, %p2633_p10 }
  0x71   : > { %2643 = shalt.err (!%p2640_p4)
}
  0x72   : > { %s3819_s18 = scalar_lea.sflag [#allocation11], %s3173_s15  ;;  %s3820_s8 = sld [smem:[#allocation44_spill]] }
  0x73   : > { %2425 = dma.hbm_to_vmem [thread:$0]  (!%p3214_p8), %s3207_s25, 16, %s3223_s14, %s3819_s18  }
  0x74   : > { %s707_s26 = scalar_lea.vmem [#allocation13], %s3196_s12 }
  0x75   : > { %s714_s30 = sshll.u32 %s707_s26, 4  ;;  %s715_s30 = int_to_ptr.vmem [resolvable:$true] %s714_s30 }
  0x78   : > { %s3259_s1 = scalar_lea.hbm %s3820_s8, %s3199_s16  ;;  %s2649_s14 = scalar_lea.hbm %s3820_s8, 32 }
  0x79   : > { %s2644_s5 = scalar_lea.hbm %s3259_s1, 16  ;;  %p2650_p9 = scmp.lt.u32.totalorder %s3259_s1, %s3820_s8 }
  0x7a   : > { %p2645_p0 = scmp.ne.s32.totalorder %s3259_s1, %s2644_s5  ;;  %p2651_p11 = scmp.lt.u32.totalorder %s2649_s14, %s2644_s5 }
  0x7b   : > { %p2653_p5 = scmp.lt.u32.totalorder %s2644_s5, %s3259_s1 }
  0x7c   : > { %p2647_p1 = pnand %p2645_p0, %p3230_p12  ;;  %p2652_p2 = por %p2651_p11, %p2650_p9 }
  0x7e   : > { %p2648_p6 = pneg %p2647_p1  ;;  %p2654_p7 = por %p2653_p5, %p2652_p2 }
  0x80   : > { %p2655_p10 = pnand %p2654_p7, %p2648_p6 }
  0x82   : > { %2658 = shalt.err (!%p2655_p10)
}
  0x83   : > { %s2659_s10 = scalar_lea.vmem %s715_s30, 16  ;;  %s2938_s26 = smov [#allocation13]  }
  0x84   : > { %p2660_p13 = scmp.ne.s32.totalorder %s715_s30, %s2659_s10  ;;  %s2664_s28 = sshll.u32 %s2938_s26, 4  ;;  %s2665_s28 = int_to_ptr.vmem [resolvable:$false] %s2664_s28 }
  0x85   : > { %s2666_s17 = scalar_lea.vmem %s2665_s28, 32  ;;  %p2667_p0 = scmp.lt.s32.totalorder %s715_s30, %s2665_s28 }
  0x86   : > { %p2662_p3 = pnand %p2660_p13, %p3230_p12  ;;  %p2668_p1 = scmp.lt.s32.totalorder %s2666_s17, %s2659_s10 }
  0x88   : > { %p2663_p4 = pneg %p2662_p3  ;;  %p2669_p8 = por %p2668_p1, %p2667_p0 }
  0x8a   : > { %p2670_p9 = pnand %p2669_p8, %p2663_p4 }
  0x8c   : > { %2673 = shalt.err (!%p2670_p9)
}
  0x8d   : > { %p3821_p11 = scmp.ne.s32.totalorder %s3815_s6, 0  ;;  %s3822_s5 = scalar_lea.sflag [#allocation14], %s3173_s15 }
  0x8e   : > { %s66_s28 = sadd.s32 1, %s2914_s3  ;;  %s59_s25 = sadd.s32 1, %s2930_s4 }
  0x8f   : > { %2431 = dma.hbm_to_vmem [thread:$0]  (!%p3821_p11), %s3259_s1, 16, %s715_s30, %s3822_s5  }
  0x90   : > { %p73_p8 = scmp.ne.s32.totalorder %s2914_s3, %s2910_s19  ;;  %p3823_p6 = scmp.ne.s32.totalorder %s3808_s20, 0 }
  0x91   : > { %p3824_p2 = scmp.eq.s32.totalorder %s2934_s29, 0  ;;  %s3292_s14 = sand.u32 1, %s2914_s3  }
  0x92   : > { %s3884_s25 = smov (!%p3823_p6, %s59_s25), %s2930_s4  ;;  %s2206_s18 = sshll.u32 %s3292_s14, 3 }
  0x93   : > { %p75_p5 = por %p3824_p2, %p73_p8  ;;  %p61_p7 = scmp.ge.s32.totalorder %s3884_s25, 2 }
  0x94   : > { %s2207_s27 = sshll.u32 %s2930_s4, 7  ;;  %s3826_s30 = sld [smem:[#allocation36_spill]] }
  0x95   : > { %s3886_s25 = smov (%p61_p7, %s3884_s25), 0  ;;  %s623_s17 = scalar_lea.vmem [#allocation5], %s2206_s18 }
  0x96   : > { %3825 = sst [smem:[#allocation34_spill]] %s3886_s25  ;;  %s63_s20 = ssub.s32 %s2930_s4, %s3886_s25 }
  0x97   : > { %s630_s5 = sshll.u32 %s623_s17, 4  ;;  %p64_p10 = scmp.eq.s32.totalorder %s63_s20, 0  ;;  %s3305_s5 = int_to_ptr.vmem [resolvable:$true] %s630_s5 }
  0x98   : > { %p3827_p13 = scmp.lt.s32.totalorder %s2934_s29, 4 }
  0x99   : > { %s3314_s10 = scalar_select %p64_p10, %s2914_s3, %s66_s28  }
  0x9a   : > { %s3301_s26 = scalar_lea.hbm %s3826_s30, %s2207_s27  ;;  %p3309_p3 = pnand %p3827_p13, %p75_p5 }
  0x9b   : > { %3829 = sst [smem:[#allocation35_spill]] %s3314_s10  ;;  %s620_s27 = scalar_lea.sflag [#allocation6], %s3292_s14 }
  0x9c   : > { %s2674_s1 = scalar_lea.hbm %s3301_s26, 128  ;;  %p2676_p0 = pneg %p3309_p3 }
  0x9d   : > { %p2675_p4 = scmp.ne.s32.totalorder %s3301_s26, %s2674_s1  ;;  %s2679_s17 = scalar_lea.hbm %s3826_s30, 256 }
  0x9e   : > { %p2680_p8 = scmp.lt.u32.totalorder %s3301_s26, %s3826_s30  ;;  %p2681_p6 = scmp.lt.u32.totalorder %s2679_s17, %s2674_s1 }
  0x9f   : > { %p2677_p1 = pnand %p2676_p0, %p2675_p4  ;;  %p2683_p5 = scmp.lt.u32.totalorder %s2674_s1, %s3301_s26 }
  0xa0   : > { %p2682_p2 = por %p2681_p6, %p2680_p8 }
  0xa1   : > { %p2678_p9 = pneg %p2677_p1 }
  0xa2   : > { %p2684_p7 = por %p2683_p5, %p2682_p2 }
  0xa4   : > { %p2685_p10 = pnand %p2684_p7, %p2678_p9 }
  0xa6   : > { %2688 = shalt.err (!%p2685_p10)
}
  0xa7   : > { %s2689_s28 = scalar_lea.vmem %s3305_s5, 128  ;;  %s2939_s18 = smov [#allocation5]  }
  0xa8   : > { %p2690_p13 = scmp.ne.s32.totalorder %s3305_s5, %s2689_s28  ;;  %s2694_s20 = sshll.u32 %s2939_s18, 4  ;;  %s2695_s20 = int_to_ptr.vmem [resolvable:$false] %s2694_s20 }
  0xa9   : > { %s2696_s2 = scalar_lea.vmem %s2695_s20, 256  ;;  %p2697_p11 = scmp.lt.s32.totalorder %s3305_s5, %s2695_s20 }
  0xaa   : > { %p2692_p4 = pnand %p2690_p13, %p2676_p0  ;;  %p2698_p8 = scmp.lt.s32.totalorder %s2696_s2, %s2689_s28 }
  0xac   : > { %p2693_p1 = pneg %p2692_p4  ;;  %p2699_p6 = por %p2698_p8, %p2697_p11 }
  0xae   : > { %p2700_p2 = pnand %p2699_p6, %p2693_p1 }
  0xb0   : > { %2703 = shalt.err (!%p2700_p2)
}
  0xb1   : > { %2419 = dma.hbm_to_vmem [thread:$0]  (!%p3309_p3), %s3301_s26, 128, %s3305_s5, %s620_s27  }
  0xb2   : > { %s2208_s25 = sshll.u32 %s2930_s4, 4  ;;  %s640_s1 = scalar_lea.vmem [#allocation7], %s3292_s14 }
  0xb3   : > { %s647_s17 = sshll.u32 %s640_s1, 4  ;;  %s3830_s10 = sld [smem:[#allocation37_spill]]  ;;  %s648_s17 = int_to_ptr.vmem [resolvable:$true] %s647_s17 }
  0xb4   : > { %s638_s28 = scalar_lea.sflag [#allocation8], %s3173_s15 }
  0xb9   : > { %s3347_s20 = scalar_lea.hbm %s3830_s10, %s2208_s25  ;;  %s2709_s5 = scalar_lea.hbm %s3830_s10, 32 }
  0xba   : > { %s2704_s2 = scalar_lea.hbm %s3347_s20, 16  ;;  %p2710_p7 = scmp.lt.u32.totalorder %s3347_s20, %s3830_s10 }
  0xbb   : > { %p2705_p11 = scmp.ne.s32.totalorder %s3347_s20, %s2704_s2  ;;  %p2711_p10 = scmp.lt.u32.totalorder %s2709_s5, %s2704_s2 }
  0xbc   : > { %p2713_p4 = scmp.lt.u32.totalorder %s2704_s2, %s3347_s20 }
  0xbd   : > { %p2707_p9 = pnand %p2705_p11, %p2676_p0  ;;  %p2712_p13 = por %p2711_p10, %p2710_p7 }
  0xbf   : > { %p2708_p5 = pneg %p2707_p9  ;;  %p2714_p1 = por %p2713_p4, %p2712_p13 }
  0xc1   : > { %p2715_p8 = pnand %p2714_p1, %p2708_p5 }
  0xc3   : > { %2718 = shalt.err (!%p2715_p8)
}
  0xc4   : > { %s2719_s25 = scalar_lea.vmem %s648_s17, 16  ;;  %s2940_s1 = smov [#allocation7]  }
  0xc5   : > { %p2720_p6 = scmp.ne.s32.totalorder %s648_s17, %s2719_s25  ;;  %s2724_s18 = sshll.u32 %s2940_s1, 4  ;;  %s2725_s18 = int_to_ptr.vmem [resolvable:$false] %s2724_s18 }
  0xc6   : > { %s2726_s26 = scalar_lea.vmem %s2725_s18, 32  ;;  %p2727_p9 = scmp.lt.s32.totalorder %s648_s17, %s2725_s18 }
  0xc7   : > { %p2722_p2 = pnand %p2720_p6, %p2676_p0  ;;  %p2728_p12 = scmp.lt.s32.totalorder %s2726_s26, %s2719_s25 }
  0xc9   : > { %p2723_p11 = pneg %p2722_p2  ;;  %p2729_p7 = por %p2728_p12, %p2727_p9 }
  0xcb   : > { %p2730_p10 = pnand %p2729_p7, %p2723_p11 }
  0xcd   : > { %2733 = shalt.err (!%p2730_p10)
}
  0xce   : > { %2422 = dma.hbm_to_vmem [thread:$0]  (!%p3309_p3), %s3347_s20, 16, %s648_s17, %s638_s28  }
  0xcf   : > { %s3831_s7 = sld [smem:[#allocation43_spill]]  ;;  %s690_s27 = scalar_lea.vmem [#allocation12], %s3196_s12 }
  0xd0   : > { %s697_s30 = sshll.u32 %s690_s27, 4  ;;  %s3832_s9 = sld [smem:[#allocation45_spill]]  ;;  %s698_s30 = int_to_ptr.vmem [resolvable:$true] %s697_s30 }
  0xd1   : > { %p3833_p3 = scmp.ne.s32.totalorder %s3818_s13, 0 }
  0xd5   : > { %s3373_s5 = scalar_lea.hbm %s3831_s7, %s3199_s16  ;;  %s2739_s28 = scalar_lea.hbm %s3831_s7, 32 }
  0xd6   : > { %s3380_s1 = scalar_lea.hbm %s3832_s9, %s3199_s16  ;;  %s2734_s18 = scalar_lea.hbm %s3373_s5, 16 }
  0xd7   : > { %p2735_p12 = scmp.ne.s32.totalorder %s3373_s5, %s2734_s18  ;;  %p2740_p13 = scmp.lt.u32.totalorder %s3373_s5, %s3831_s7 }
  0xd8   : > { %p2741_p4 = scmp.lt.u32.totalorder %s2739_s28, %s2734_s18  ;;  %p2743_p8 = scmp.lt.u32.totalorder %s2734_s18, %s3373_s5 }
  0xd9   : > { %p2737_p0 = pnand %p2735_p12, %p3833_p3 }
  0xda   : > { %p2742_p1 = por %p2741_p4, %p2740_p13 }
  0xdb   : > { %p2738_p5 = pneg %p2737_p0 }
  0xdc   : > { %p2744_p6 = por %p2743_p8, %p2742_p1 }
  0xde   : > { %p2745_p2 = pnand %p2744_p6, %p2738_p5 }
  0xe0   : > { %2748 = shalt.err (!%p2745_p2)
}
  0xe1   : > { %s2749_s14 = scalar_lea.vmem %s698_s30, 16  ;;  %s2941_s27 = smov [#allocation12]  }
  0xe2   : > { %p2750_p11 = scmp.ne.s32.totalorder %s698_s30, %s2749_s14  ;;  %s2754_s25 = sshll.u32 %s2941_s27, 4  ;;  %s2755_s25 = int_to_ptr.vmem [resolvable:$false] %s2754_s25 }
  0xe3   : > { %s2756_s8 = scalar_lea.vmem %s2755_s25, 32  ;;  %p2757_p10 = scmp.lt.s32.totalorder %s698_s30, %s2755_s25 }
  0xe4   : > { %p2752_p9 = pnand %p2750_p11, %p3833_p3  ;;  %p2758_p12 = scmp.lt.s32.totalorder %s2756_s8, %s2749_s14 }
  0xe6   : > { %p2753_p7 = pneg %p2752_p9  ;;  %p2759_p0 = por %p2758_p12, %p2757_p10 }
  0xe8   : > { %p2760_p4 = pnand %p2759_p0, %p2753_p7 }
  0xea   : > { %2763 = shalt.err (!%p2760_p4)
}
  0xeb   : > { %p3834_p13 = scmp.ne.s32.totalorder %s3815_s6, 0  ;;  %s3835_s18 = scalar_lea.sflag [#allocation11], %s3173_s15 }
  0xec   : > { %s724_s17 = scalar_lea.vmem [#allocation15], %s3196_s12  ;;  %s2764_s28 = scalar_lea.hbm %s3380_s1, 16 }
  0xed   : > { %2428 = dma.hbm_to_vmem [thread:$0]  (!%p3834_p13), %s3373_s5, 16, %s698_s30, %s3835_s18  }
  0xee   : > { %s731_s20 = sshll.u32 %s724_s17, 4  ;;  %p2765_p5 = scmp.ne.s32.totalorder %s3380_s1, %s2764_s28  ;;  %s732_s20 = int_to_ptr.vmem [resolvable:$true] %s731_s20 }
  0xef   : > { %s2769_s14 = scalar_lea.hbm %s3832_s9, 32  ;;  %p2770_p6 = scmp.lt.u32.totalorder %s3380_s1, %s3832_s9 }
  0xf0   : > { %p2767_p1 = pnand %p2765_p5, %p3833_p3  ;;  %p2771_p2 = scmp.lt.u32.totalorder %s2769_s14, %s2764_s28 }
  0xf1   : > { %p2773_p9 = scmp.lt.u32.totalorder %s2764_s28, %s3380_s1 }
  0xf2   : > { %p2768_p8 = pneg %p2767_p1  ;;  %p2772_p11 = por %p2771_p2, %p2770_p6 }
  0xf4   : > { %p2774_p7 = por %p2773_p9, %p2772_p11 }
  0xf6   : > { %p2775_p10 = pnand %p2774_p7, %p2768_p8 }
  0xf8   : > { %2778 = shalt.err (!%p2775_p10)
}
  0xf9   : > { %s2779_s5 = scalar_lea.vmem %s732_s20, 16  ;;  %s2942_s30 = smov [#allocation15]  }
  0xfa   : > { %p2780_p12 = scmp.ne.s32.totalorder %s732_s20, %s2779_s5  ;;  %s2784_s8 = sshll.u32 %s2942_s30, 4  ;;  %s2785_s8 = int_to_ptr.vmem [resolvable:$false] %s2784_s8 }
  0xfb   : > { %s2786_s18 = scalar_lea.vmem %s2785_s8, 32  ;;  %p2787_p5 = scmp.lt.s32.totalorder %s732_s20, %s2785_s8 }
  0xfc   : > { %p2782_p0 = pnand %p2780_p12, %p3833_p3  ;;  %p2788_p1 = scmp.lt.s32.totalorder %s2786_s18, %s2779_s5 }
  0xfe   : > { %p2783_p4 = pneg %p2782_p0  ;;  %p2789_p13 = por %p2788_p1, %p2787_p5 }
 0x100   : > { %p2790_p2 = pnand %p2789_p13, %p2783_p4 }
 0x102   : > { %2793 = shalt.err (!%p2790_p2)
}
 0x103   : > { %p3836_p6 = scmp.ne.s32.totalorder %s3815_s6, 0  ;;  %s3837_s17 = scalar_lea.sflag [#allocation14], %s3173_s15 }
 0x104   : > { %s3838_s11 = sld [smem:[#allocation47_spill]]  ;;  %s749_s14 = scalar_lea.vmem [#allocation16], %s3196_s12 }
 0x105   : > { %2434 = dma.hbm_to_vmem [thread:$0]  (!%p3836_p6), %s3380_s1, 16, %s732_s20, %s3837_s17  }
 0x106   : > { %s756_s27 = sshll.u32 %s749_s14, 4  ;;  %s747_s25 = scalar_lea.sflag [#allocation17], %s3196_s12  ;;  %s757_s27 = int_to_ptr.vmem [resolvable:$true] %s756_s27 }
 0x10a   : > { %s3425_s2 = scalar_lea.hbm %s3838_s11, %s3199_s16  ;;  %s2799_s20 = scalar_lea.hbm %s3838_s11, 32 }
 0x10b   : > { %s2794_s15 = scalar_lea.hbm %s3425_s2, 16  ;;  %p2800_p9 = scmp.lt.u32.totalorder %s3425_s2, %s3838_s11 }
 0x10c   : > { %p2795_p13 = scmp.ne.s32.totalorder %s3425_s2, %s2794_s15  ;;  %p2801_p7 = scmp.lt.u32.totalorder %s2799_s20, %s2794_s15 }
 0x10d   : > { %p2803_p12 = scmp.lt.u32.totalorder %s2794_s15, %s3425_s2 }
 0x10e   : > { %p2797_p8 = pnand %p2795_p13, %p3833_p3  ;;  %p2802_p10 = por %p2801_p7, %p2800_p9 }
 0x110   : > { %p2798_p11 = pneg %p2797_p8  ;;  %p2804_p0 = por %p2803_p12, %p2802_p10 }
 0x112   : > { %p2805_p4 = pnand %p2804_p0, %p2798_p11 }
 0x114   : > { %2808 = shalt.err (!%p2805_p4)
}
 0x115   : > { %s2809_s12 = scalar_lea.vmem %s757_s27, 16  ;;  %s2943_s8 = smov [#allocation16]  }
 0x116   : > { %p2810_p5 = scmp.ne.s32.totalorder %s757_s27, %s2809_s12  ;;  %s2814_s18 = sshll.u32 %s2943_s8, 4  ;;  %s2815_s18 = int_to_ptr.vmem [resolvable:$false] %s2814_s18 }
 0x117   : > { %s2816_s17 = scalar_lea.vmem %s2815_s18, 32  ;;  %p2817_p13 = scmp.lt.s32.totalorder %s757_s27, %s2815_s18 }
 0x118   : > { %p2812_p1 = pnand %p2810_p5, %p3833_p3  ;;  %p2818_p8 = scmp.lt.s32.totalorder %s2816_s17, %s2809_s12 }
 0x11a   : > { %p2813_p2 = pneg %p2812_p1  ;;  %p2819_p6 = por %p2818_p8, %p2817_p13 }
 0x11c   : > { %p2820_p7 = pnand %p2819_p6, %p2813_p2 }
 0x11e   : > { %2823 = shalt.err (!%p2820_p7)
}
 0x11f   : > { %p3839_p9 = scmp.ne.s32.totalorder %s3815_s6, 0  ;;  %p3840_p11 = scmp.ne.s32.totalorder %s3806_s23, 0 }
 0x120   : > { %s3449_s13 = sand.u32 (!%p3840_p11), 1, %s2910_s19   ;;  %p3841_p3 = scmp.ne.s32.totalorder (!%p3840_p11), %s3803_s21, 0 }
 0x121   : > { %2437 = dma.hbm_to_vmem [thread:$0]  (!%p3839_p9), %s3425_s2, 16, %s757_s27, %s747_s25  }
 0x122   : > { %791 = sbr.rel (%p3840_p11) target bundleno = 3591 (0xe07), region = 100  ;;  %s2215_s28 = sshll.u32 (!%p3840_p11), %s3449_s13, 3 }
 0x123   : > { %s794_s26 = scalar_lea.sflag (!%p3840_p11), [#allocation6], %s3449_s13  ;;  %s3453_s14 = scalar_lea.vmem (!%p3840_p11), [#allocation5], %s2215_s28 }
 0x129   : > { %2869 = dma.done.wait (%p3841_p3), %s794_s26, 128  }
 0x12a   : > { %2871 = vsyncadd (%p3841_p3), %s794_s26, 4294967168  ;;  %s3842_s6 = sadd.s32 4294967295, %s2934_s29  }
 0x12b   : > { %s802_s23 = sand.u32 1, %s3842_s6  }
 0x12c   : > { %s803_s2 = scalar_lea.sflag [#allocation8], %s802_s23 }
 0x12d   : > { %2873 = dma.done.wait (%p3841_p3), %s803_s2, 16  }
 0x12e   : > { %2875 = vsyncadd (%p3841_p3), %s803_s2, 4294967280  ;;  %p3843_p6 = scmp.ne.s32.totalorder %s3802_s0, 0 }
 0x130   : > { %2877 = dma.done.wait (%p3843_p6), [#allocation8], 16  }
 0x131   : > { %2879 = vsyncadd (%p3843_p6), [#allocation8], 4294967280  ;;  %s3471_s25 = sand.u32 1, %s2898_s24   ;;  %s815_s15 = scalar_lea.sflag [#allocation11], %s802_s23 }
 0x132   : > { %p3844_p10 = scmp.ne.s32.totalorder %s3805_s22, 0 }
 0x134   : > { %2881 = dma.done.wait (%p3844_p10), %s815_s15, 32  }
 0x135   : > { %2883 = vsyncadd (%p3844_p10), %s815_s15, 4294967264  ;;  %s831_s1 = scalar_lea.sflag [#allocation14], %s802_s23 }
 0x136   : > { %2885 = dma.done.wait (%p3844_p10), %s831_s1, 32  }
 0x137   : > { %2887 = vsyncadd (%p3844_p10), %s831_s1, 4294967264  ;;  %s847_s30 = scalar_lea.sflag [#allocation17], %s3471_s25 }
 0x138   : > { %2889 = dma.done.wait (%p3844_p10), %s847_s30, 16  }
 0x139   : > { %2891 = vsyncadd (%p3844_p10), %s847_s30, 4294967280  ;;  %s3845_s12 = sld [smem:[#allocation28_spill]]  ;;  %s3846_s8 = sld [smem:[#allocation29_spill]] }
 0x13a   : > { %s3847_s6 = sld [smem:[#allocation40_spill]]  ;;  %s3848_s1 = sld [smem:[#allocation42_spill]] }
 0x13b   : > { %s3849_s20 = sld [smem:[#allocation46_spill]]  ;;  %s3850_s7 = sld [smem:[#allocation48_spill]] }
 0x13c   : > { %s3851_s22 = sld [smem:[#allocation49_spill]]  ;;  %s3852_s3 = sld [smem:[#allocation50_spill]] }
 0x13d   : > { %s3853_s19 = sld [smem:[#allocation51_spill]]  ;;  %s3854_s16 = sld [smem:[#allocation55_spill]] }
 0x13f   : > { %p957_p12 = scmp.lt.s32.totalorder %s3845_s12, 1  ;;  %p986_p0 = scmp.lt.s32.totalorder %s3846_s8, 1 }
 0x140   : > { %p2225_p4 = scmp.ne.s32.totalorder %s3845_s12, 0 }
 0x141   : > { %s3494_s18 = scalar_select %p957_p12, %s3845_s12, 1 }
 0x142   : > { %s3888_s8 = smov (!%p986_p0, %s3846_s8), 1  ;;  %993 = sbr.rel (%p2225_p4) target bundleno = 638 (0x27e), region = 136 }
 0x143   : > { %s2265_s17 = sshll.u32 %s3494_s18, 4  ;;  %s2268_s28 = sshll.u32 %s3494_s18, 5  ;;  %v994_v1 = vld [vmem:[%s3453_s14] sm:$0xff] (!%p2225_p4)  ;;  %vm997_vm0 = vcmask (!%p2225_p4), 261120   ;;  %v2227_v14 = vld [vmem:[#allocation9] ss:$0 sm:$0xff] (!%p2225_p4) }
 0x144   : > { %s3504_s23 = scalar_lea.vmem %s3847_s6, %s2265_s17  ;;  %s3509_s30 = scalar_lea.vmem %s3848_s1, %s2265_s17  ;;  %v998_v2 = vsel (!%p2225_p4), %vm997_vm0, %v994_v1, 0.0 }
 0x145   : > { %s3514_s21 = scalar_lea.vmem %s3849_s20, %s2265_s17  ;;  %s3519_s9 = scalar_lea.vmem %s3850_s7, %s2268_s28  ;;  %999 = vadd.xlane.f32.xlu0 (!%p2225_p4), %v998_v2 }
 0x146   : > { %s979_s26 = scalar_lea.vmem %s3851_s22, %s3494_s18  ;;  %s982_s2 = scalar_lea.vmem %s3852_s3, %s3494_s18 }
 0x147   : > { %s985_s24 = scalar_lea.vmem %s3853_s19, %s3494_s18  ;;  %s988_s17 = scalar_lea.vmem %s3854_s16, %s3888_s8 }
 0x148   : > { %s3855_s19 = sld [smem:[#allocation38_spill]] (!%p2225_p4) }
 0x14e   : > { %v2226_v12 = vld [vmem:[%s3855_s19] ss:$0 sm:$0xff] }
 0x1d2   : > { %v1000_v3 = vpop.xlane.xlu0 %999 }
 0x1d3   : > { %v1002_v4 = vmul.f32 0.03125, %v1000_v3 }
 0x1d5   : > { %v1003_v5 = vsub.f32 %v994_v1, %v1002_v4 }
 0x1d7   : > { %v1004_v6 = vmul.f32 %v1003_v5, %v1003_v5 }
 0x1d9   : > { %v1005_v7 = vsel %vm997_vm0, %v1004_v6, 0.0 }
 0x1da   : > { %1006 = vadd.xlane.f32.xlu0 %v1005_v7 }
 0x267   : > { %v1007_v8 = vpop.xlane.xlu0 %1006 }
 0x268   : > { %v1008_v9 = vmul.f32 0.03125, %v1007_v8 }
 0x26a   : > { %v1009_v10 = vadd.f32 1e-12, %v1008_v9 }
 0x26c   : > { %2548 = vrsqrt.f32 %v1009_v10 }
 0x276   : > { %v2549_v11 = vpop.eup %2548 }
 0x277   : > { %v1011_v13 = vmul.f32 %v2549_v11, %v1003_v5 }
 0x279   : > { %v1018_v15 = vmul.f32 %v2226_v12, %v1011_v13 }
 0x27b   : > { %v1025_v16 = vadd.f32 %v2227_v14, %v1018_v15 }
 0x27d   : > { %1026 = vst.msk [vmem:[#allocation2] sm:$0xff] %vm997_vm0, %v1025_v16 }
 0x27e PF: > { %v2550_v17 = vld [vmem:[%s3504_s23] sm:$0xff]   ;;  %v2944_v18 = vmov 0.0   ;;  %v2551_v19 = vld [vmem:[%s3504_s23 + $0x8] sm:$0xff]   ;;  %vm2945_vm1 = vmmov 0   ;;  %vm1053_vm2 = vcmask 261120   ;;  %s3856_s3 = scalar_lea.vmem [#allocation10], %s3471_s25 }
 0x27f   : > { %2302 = vmatprep.subr.bf16.mxu0 %v2944_v18  ;;  %2310 = vmatprep.subr.bf16.mxu1 %v2944_v18  ;;  %v2228_v22 = vld [vmem:[%s3856_s3] ss:$0 sm:$0xff]  ;;  %s2946_s4 = smov 96   ;;  %s2947_s10 = smov 120   ;;  %vm1109_vm3 = vcmask 64512   ;;  %vm1173_vm4 = vcmask 1043456  }
 0x280   : > { %2303 = vmatpush3.bf16.msra.mxu0 %v2550_v17  ;;  %2306 = vmatprep.mubr.msk.bf16.mxu0 %vm2945_vm1, %v2944_v18  ;;  %s2948_s14 = smov 88   ;;  %s2949_s27 = smov 80   ;;  %vm1333_vm5 = vcmask 130112   ;;  %vm1449_vm6 = vcmask 195712   ;;  %vm1565_vm7 = vcmask 261312   ;;  %vm1782_vm8 = vcmask 523264  }
 0x281   : > { %2304 = vmatprep.subr.bf16.mxu0 %v2944_v18  ;;  %2312 = vmatprep.mubr.msk.bf16.mxu1 %vm2945_vm1, %v2944_v18  ;;  %s2950_s5 = smov 112   ;;  %s2951_s12 = smov 72  }
 0x282   : > { %s2952_s28 = smov 104   ;;  %s3857_s23 = scalar_lea.vmem [#allocation7], %s3449_s13 }
 0x283   : > { %v2232_v42 = vld [vmem:[%s3857_s23] ss:$0 sm:$0xff]  ;;  %s2953_s13 = smov 56   ;;  %s2954_s22 = smov 64  }
 0x284   : > { %v3551_v20 = vld [vmem:[#allocation2] sm:$0xff]  ;;  %2305 = vmatpush3.bf16.msra.mxu0 %v2551_v19  ;;  %s2955_s6 = smov 40   ;;  %s2956_s15 = smov 48  }
 0x285   : > { %v1029_v21 = vpack.c.bf16 %v3551_v20, %v3551_v20  ;;  %2316 = vmatprep.subr.bf16.mxu0 %v2944_v18  ;;  %s2957_s1 = smov 8   ;;  %s2958_s0 = smov 16  }
 0x286   : > { %s2959_s20 = smov 24   ;;  %s3859_s16 = scalar_lea.vmem [#allocation13], %s3471_s25 }
 0x287   : > { %2307 = vmatmul.mubr.msk.bf16.vlgmr.msra.gmra.mrb[0].mxu0 %vm1053_vm2, %v1029_v21  ;;  %s3860_s7 = scalar_lea.vmem [#allocation15], %s3471_s25 }
 0x288   : > { %2318 = vmatprep.mubr.msk.bf16.mxu0 %vm2945_vm1, %v2944_v18 }
 0x35a   : > { %v1091_v23 = vpop.f32.mrb[0].mxu0 }
 0x35b   : > { %v1092_v24 = vadd.f32 %v2228_v22, %v1091_v23  ;;  %v2308_v25 = vpop.f32.mrb[1].mxu0 }
 0x35c   : > { %v1094_v26 = vpop.f32.mrb[2].mxu0 }
 0x35d   : > { %v1097_v27 = vmul.f32 0.35355338, %v1092_v24  ;;  %v3564_v28 = vpack.c.bf16 %v1092_v24, %v1092_v24  ;;  %v2309_v29 = vpop.f32.mrb[3].mxu0 }
 0x35f   : > { %v1098_v30 = vpack.c.bf16 %v1097_v27, %v1097_v27  ;;  %1107 = vrot.lane.b32.xlu0 %v3564_v28, %s2946_s4 }
 0x361   : > { %1219 = vrot.lane.b32.xlu1 %v1098_v30, %s2947_s10 }
 0x363   : > { %1221 = vrot.lane.b32.xlu0 %v3564_v28, %s2948_s14 }
 0x365   : > { %1337 = vrot.lane.b32.xlu1 %v3564_v28, %s2949_s27  ;;  %s3865_s27 = sld [smem:[#allocation28_spill]] }
 0x367   : > { %1335 = vrot.lane.b32.xlu0 %v1098_v30, %s2950_s5 }
 0x369   : > { %1453 = vrot.lane.b32.xlu1 %v3564_v28, %s2951_s12 }
 0x36b   : > { %1451 = vrot.lane.b32.xlu0 %v1098_v30, %s2952_s28  ;;  %p2259_p5 = scmp.ne.s32.totalorder %s3865_s27, 1 }
 0x36c   : > { %s3866_s28 = sld [smem:[#allocation52_spill]] (!%p2259_p5)  ;;  %vm2961_vm9 = vmmov (!%p2259_p5), 0   ;;  %vm1925_vm10 = vcmask (!%p2259_p5), 253952   ;;  %vm1931_vm11 = vcmask (!%p2259_p5), 0  }
 0x3d1   : > { %v1108_v31 = vpop.permute.xlu0 %1107 }
 0x3d2   : > { %v1114_v32 = vsel %vm1109_vm3, %v1108_v31, 0 }
 0x3d3   : > { %2311 = vmatpush3.bf16.xpose.msra.mxu1 %v1114_v32  ;;  %v1220_v34 = vpop.permute.xlu1 %1219 }
 0x3d4   : > { %2322 = vmatprep.subr.bf16.mxu1 %v2944_v18 }
 0x3d5   : > { %v1222_v33 = vpop.permute.xlu0 %1221 }
 0x3d6   : > { %v1227_v35 = vsel %vm1109_vm3, %v1222_v33, 0 }
 0x3d7   : > { %v1338_v36 = vpop.permute.xlu1 %1337 }
 0x3d8   : > { %v1343_v37 = vsel %vm1109_vm3, %v1338_v36, 0 }
 0x3d9   : > { %v1336_v39 = vpop.permute.xlu0 %1335 }
 0x3da   : > { %2313 = vmatmul.mubr.msk.bf16.vlgmr.msra.gmra.mrb[0].mxu1 %vm1109_vm3, %v1098_v30 }
 0x3db   : > { %2323 = vmatpush3.bf16.xpose.msra.mxu1 %v1227_v35  ;;  %2324 = vmatprep.mubr.msk.bf16.mxu1 %vm2945_vm1, %v2944_v18  ;;  %v1454_v38 = vpop.permute.xlu1 %1453 }
 0x3dc   : > { %2334 = vmatprep.subr.bf16.mxu1 %v2944_v18  ;;  %v1459_v40 = vsel %vm1109_vm3, %v1454_v38, 0 }
 0x3dd   : > { %v1452_v41 = vpop.permute.xlu0 %1451 }
 0x3e2   : > { %2325 = vmatmul.mubr.msk.bf16.vlgmr.msra.gmra.mrb[4].mxu1 %vm1109_vm3, %v1220_v34 }
 0x3e3   : > { %2335 = vmatpush3.bf16.xpose.msra.mxu1 %v1343_v37  ;;  %2336 = vmatprep.mubr.msk.bf16.mxu1 %vm2945_vm1, %v2944_v18 }
 0x3e4   : > { %2346 = vmatprep.subr.bf16.mxu1 %v2944_v18 }
 0x3ea   : > { %2337 = vmatmul.mubr.msk.bf16.vlgmr.msra.gmra.mrb[8].mxu1 %vm1109_vm3, %v1336_v39 }
 0x3eb   : > { %2347 = vmatpush3.bf16.xpose.msra.mxu1 %v1459_v40  ;;  %2348 = vmatprep.mubr.msk.bf16.mxu1 %vm2945_vm1, %v2944_v18 }
 0x3ec   : > { %2358 = vmatprep.subr.bf16.mxu1 %v2944_v18 }
 0x3f2   : > { %2349 = vmatmul.mubr.msk.bf16.vlgmr.msra.gmra.mrb[12].mxu1 %vm1109_vm3, %v1452_v41 }
 0x3f3   : > { %2362 = vmatprep.mubr.msk.bf16.mxu1 %vm2945_vm1, %v2944_v18 }
 0x4ad   : > { %v1150_v43 = vpop.f32.mrb[0].mxu1 }
 0x4ae   : > { %v1151_v44 = vadd.f32 %v2232_v42, %v1150_v43  ;;  %v2314_v45 = vpop.f32.mrb[1].mxu1 }
 0x4af   : > { %v1153_v46 = vpop.f32.mrb[2].mxu1 }
 0x4b0   : > { %v2315_v47 = vpop.f32.mrb[3].mxu1  ;;  %v1156_v48 = vsel %vm1109_vm3, %v1151_v44, -inf }
 0x4b1   : > { %1157 = vmax.xlane.f32.xlu1 %v1156_v48 }
 0x4b5   : > { %v1263_v49 = vpop.f32.mrb[4].mxu1 }
 0x4b6   : > { %v1264_v50 = vadd.f32 %v2232_v42, %v1263_v49  ;;  %v2326_v51 = vpop.f32.mrb[5].mxu1 }
 0x4b7   : > { %v1266_v52 = vpop.f32.mrb[6].mxu1 }
 0x4b8   : > { %v2327_v53 = vpop.f32.mrb[7].mxu1  ;;  %v1269_v54 = vsel %vm1109_vm3, %v1264_v50, -inf }
 0x4b9   : > { %1270 = vmax.xlane.f32.xlu0 %v1269_v54 }
 0x4bd   : > { %v1379_v55 = vpop.f32.mrb[8].mxu1 }
 0x4be   : > { %v1380_v56 = vadd.f32 %v2232_v42, %v1379_v55  ;;  %v2338_v57 = vpop.f32.mrb[9].mxu1 }
 0x4bf   : > { %v1382_v58 = vpop.f32.mrb[10].mxu1  ;;  %v2552_v57 = vld [vmem:[%s3509_s30] sm:$0xff]  }
 0x4c0   : > { %v2339_v59 = vpop.f32.mrb[11].mxu1  ;;  %v1385_v60 = vsel %vm1109_vm3, %v1380_v56, -inf  ;;  %2359 = vmatpush3.bf16.msra.mxu1 %v2552_v57  ;;  %v2553_v58 = vld [vmem:[%s3509_s30 + $0x8] sm:$0xff]   ;;  %s3858_s30 = scalar_lea.vmem [#allocation12], %s3471_s25 }
 0x4c1   : > { %1386 = vmax.xlane.f32.xlu0 %v1385_v60  ;;  %2360 = vmatprep.subr.bf16.mxu1 %v2944_v18 }
 0x4c4   : > { %2361 = vmatpush3.bf16.msra.mxu1 %v2553_v58 }
 0x4c5   : > { %v1495_v61 = vpop.f32.mrb[12].mxu1  ;;  %2374 = vmatprep.subr.bf16.mxu1 %v2944_v18 }
 0x4c6   : > { %v1496_v62 = vadd.f32 %v2232_v42, %v1495_v61  ;;  %v2350_v63 = vpop.f32.mrb[13].mxu1 }
 0x4c7   : > { %v1498_v0 = vpop.f32.mrb[14].mxu1 }
 0x4c8   : > { %v2351_v1 = vpop.f32.mrb[15].mxu1  ;;  %v1501_v2 = vsel %vm1109_vm3, %v1496_v62, -inf }
 0x4c9   : > { %1502 = vmax.xlane.f32.xlu1 %v1501_v2 }
 0x53e   : > { %v1158_v3 = vpop.xlane.xlu1 %1157 }
 0x53f   : > { %v1159_v4 = vsub.f32 %v1151_v44, %v1158_v3 }
 0x541   : > { %v1160_v5 = vmul.f32 1.442695, %v1159_v4 }
 0x543   : > { %2560 = vpow2.f32 %v1160_v5 }
 0x546   : > { %v1271_v6 = vpop.xlane.xlu0 %1270 }
 0x547   : > { %v1272_v7 = vsub.f32 %v1264_v50, %v1271_v6 }
 0x549   : > { %v1273_v8 = vmul.f32 1.442695, %v1272_v7 }
 0x54b   : > { %2562 = vpow2.f32 %v1273_v8  ;;  %v2241_v8 = vld [vmem:[%s3858_s30] ss:$0 sm:$0xff] }
 0x54d   : > { %v2561_v9 = vpop.eup %2560 }
 0x54e   : > { %v1387_v10 = vpop.xlane.xlu0 %1386  ;;  %v1162_v11 = vsel %vm1109_vm3, %v2561_v9, 0.0 }
 0x54f   : > { %v1388_v12 = vsub.f32 %v1380_v56, %v1387_v10  ;;  %1163 = vadd.xlane.f32.xlu0 %v1162_v11 }
 0x551   : > { %v1389_v13 = vmul.f32 1.442695, %v1388_v12 }
 0x553   : > { %2564 = vpow2.f32 %v1389_v13 }
 0x555   : > { %v2563_v14 = vpop.eup %2562 }
 0x556   : > { %v1275_v15 = vsel %vm1109_vm3, %v2563_v14, 0.0  ;;  %v1503_v19 = vpop.xlane.xlu1 %1502 }
 0x557   : > { %1276 = vadd.xlane.f32.xlu1 %v1275_v15  ;;  %v1504_v21 = vsub.f32 %v1496_v62, %v1503_v19 }
 0x559   : > { %v1505_v22 = vmul.f32 1.442695, %v1504_v21 }
 0x55b   : > { %2566 = vpow2.f32 %v1505_v22 }
 0x55d   : > { %v2565_v16 = vpop.eup %2564 }
 0x55e   : > { %v1391_v17 = vsel %vm1109_vm3, %v2565_v16, 0.0 }
 0x55f   : > { %1392 = vadd.xlane.f32.xlu0 %v1391_v17 }
 0x565   : > { %v2567_v23 = vpop.eup %2566 }
 0x566   : > { %v1507_v24 = vsel %vm1109_vm3, %v2567_v23, 0.0 }
 0x568   : > { %1281 = vrot.lane.b32.xlu1 %v3564_v28, %s2953_s13  ;;  %s3867_s13 = smov (!%p2259_p5), %s3866_s28 }
 0x575   : > { %1168 = vrot.lane.b32.xlu0 %v3564_v28, %s2954_s22  ;;  %s3868_s22 = sld [smem:[#allocation53_spill]] (!%p2259_p5) }
 0x579   : > { %1513 = vrot.lane.b32.xlu0 %v3564_v28, %s2955_s6 }
 0x58c   : > { %1508 = vadd.xlane.f32.xlu1 %v1507_v24  ;;  %v2555_v24 = vld [vmem:[%s3514_s21 + $0x8] sm:$0xff]  }
 0x59d   : > { %1397 = vrot.lane.b32.xlu1 %v3564_v28, %s2956_s15 }
 0x5dc   : > { %v1164_v25 = vpop.xlane.xlu0 %1163 }
 0x5dd   : > { %2568 = vrcp.f32 %v1164_v25 }
 0x5e4   : > { %v1277_v26 = vpop.xlane.xlu1 %1276 }
 0x5e5   : > { %2570 = vrcp.f32 %v1277_v26 }
 0x5e7   : > { %v2569_v27 = vpop.eup %2568 }
 0x5e8   : > { %v1166_v30 = vmul.f32 %v2569_v27, %v2561_v9  ;;  %v1282_v33 = vpop.permute.xlu1 %1281 }
 0x5e9   : > { %v1287_v36 = vsel %vm1173_vm4, %v1282_v33, 0 }
 0x5ea   : > { %v1167_v34 = vpack.c.bf16 %v1166_v30, %v1166_v30 }
 0x5ec   : > { %v1393_v29 = vpop.xlane.xlu0 %1392 }
 0x5ed   : > { %2572 = vrcp.f32 %v1393_v29  ;;  %v2245_v29 = vld [vmem:[%s3859_s16] ss:$0 sm:$0xff] }
 0x5ef   : > { %v2571_v35 = vpop.eup %2570 }
 0x5f0   : > { %v1169_v31 = vpop.permute.xlu0 %1168  ;;  %v1279_v28 = vmul.f32 %v2571_v35, %v2563_v14  ;;  %v2556_v35 = vld [vmem:[%s3519_s9] sm:$0xff]  }
 0x5f1   : > { %v1175_v32 = vsel %vm1173_vm4, %v1169_v31, 0  ;;  %v2246_v31 = vld [vmem:[%s3860_s7] ss:$0 sm:$0xff] }
 0x5f2   : > { %2317 = vmatpush3.bf16.msra.mxu0 %v1175_v32  ;;  %v1280_v37 = vpack.c.bf16 %v1279_v28, %v1279_v28  ;;  %v2558_v28 = vld [vmem:[%s3519_s9 + $0x10] sm:$0xff]  }
 0x5f3   : > { %2328 = vmatprep.subr.bf16.mxu0 %v2944_v18 }
 0x5f4   : > { %v1514_v43 = vpop.permute.xlu0 %1513 }
 0x5f5   : > { %2319 = vmatmul.mubr.msk.bf16.vlgmr.msra.gmra.mrb[4].mxu0 %vm1109_vm3, %v1167_v34  ;;  %v1519_v45 = vsel %vm1173_vm4, %v1514_v43, 0 }
 0x5f6   : > { %2329 = vmatpush3.bf16.msra.mxu0 %v1287_v36  ;;  %2330 = vmatprep.mubr.msk.bf16.mxu0 %vm2945_vm1, %v2944_v18  ;;  %v2557_v36 = vld [vmem:[%s3519_s9 + $0x8] sm:$0xff]  }
 0x5f7   : > { %2340 = vmatprep.subr.bf16.mxu0 %v2944_v18  ;;  %v2573_v38 = vpop.eup %2572 }
 0x5f8   : > { %v1395_v40 = vmul.f32 %v2573_v38, %v2565_v16 }
 0x5fa   : > { %v1396_v44 = vpack.c.bf16 %v1395_v40, %v1395_v40 }
 0x5fd   : > { %2331 = vmatmul.mubr.msk.bf16.vlgmr.msra.gmra.mrb[8].mxu0 %vm1109_vm3, %v1280_v37  ;;  %v2559_v37 = vld [vmem:[%s3519_s9 + $0x18] sm:$0xff]  }
 0x5fe   : > { %2342 = vmatprep.mubr.msk.bf16.mxu0 %vm2945_vm1, %v2944_v18 }
 0x619   : > { %v1509_v39 = vpop.xlane.xlu1 %1508 }
 0x61a   : > { %2574 = vrcp.f32 %v1509_v39 }
 0x61d   : > { %v1398_v41 = vpop.permute.xlu1 %1397 }
 0x61e   : > { %v1403_v42 = vsel %vm1173_vm4, %v1398_v41, 0 }
 0x61f   : > { %2341 = vmatpush3.bf16.msra.mxu0 %v1403_v42 }
 0x620   : > { %2352 = vmatprep.subr.bf16.mxu0 %v2944_v18 }
 0x622   : > { %2343 = vmatmul.mubr.msk.bf16.vlgmr.msra.gmra.mrb[12].mxu0 %vm1109_vm3, %v1396_v44 }
 0x623   : > { %2353 = vmatpush3.bf16.msra.mxu0 %v1519_v45  ;;  %2354 = vmatprep.mubr.msk.bf16.mxu0 %vm2945_vm1, %v2944_v18 }
 0x624   : > { %v2575_v46 = vpop.eup %2574  ;;  %2366 = vmatprep.subr.bf16.mxu0 %v2944_v18 }
 0x625   : > { %v1511_v47 = vmul.f32 %v2575_v46, %v2567_v23  ;;  %v2554_v23 = vld [vmem:[%s3514_s21] sm:$0xff]   ;;  %s3861_s21 = scalar_lea.vmem [#allocation16], %s3471_s25 }
 0x626   : > { %v2247_v38 = vld [vmem:[%s3861_s21] ss:$0 sm:$0xff] }
 0x627   : > { %v1512_v48 = vpack.c.bf16 %v1511_v47, %v1511_v47 }
 0x62a   : > { %2355 = vmatmul.mubr.msk.bf16.vlgmr.msra.gmra.mrb[16].mxu0 %vm1109_vm3, %v1512_v48 }
 0x62b   : > { %2370 = vmatprep.mubr.msk.bf16.mxu0 %vm2945_vm1, %v2944_v18  ;;  %2367 = vmatpush3.bf16.msra.mxu0 %v2554_v23 }
 0x62c   : > { %2368 = vmatprep.subr.bf16.mxu0 %v2944_v18 }
 0x62f   : > { %2369 = vmatpush3.bf16.msra.mxu0 %v2555_v24 }
 0x6c8   : > { %v1211_v49 = vpop.f32.mrb[4].mxu0 }
 0x6c9   : > { %1217 = vst.msk [vmem:[#allocation3] sm:$0xff] %vm1109_vm3, %v1211_v49  ;;  %v2320_v50 = vpop.f32.mrb[5].mxu0 }
 0x6ca   : > { %v1214_v51 = vpop.f32.mrb[6].mxu0 }
 0x6cb   : > { %v2321_v52 = vpop.f32.mrb[7].mxu0 }
 0x6d0   : > { %v1323_v53 = vpop.f32.mrb[8].mxu0 }
 0x6d1   : > { %1330 = vrot.lane.b32.xlu1 %v1323_v53, %s2957_s1  ;;  %v2332_v54 = vpop.f32.mrb[9].mxu0  ;;  %v2251_v53 = vld [vmem:[%s979_s26] ss:$0 sm:$0xff]  ;;  %s3869_s1 = sld [smem:[#allocation54_spill]] (!%p2259_p5) }
 0x6d2   : > { %v1326_v55 = vpop.f32.mrb[10].mxu0 }
 0x6d3   : > { %v2333_v56 = vpop.f32.mrb[11].mxu0 }
 0x6d7   : > { %v1923_v23 = vld [vmem:[%s3869_s1] sm:$0x1] (!%p2259_p5) }
 0x6f5   : > { %v1439_v59 = vpop.f32.mrb[12].mxu0 }
 0x6f6   : > { %1446 = vrot.lane.b32.xlu0 %v1439_v59, %s2958_s0  ;;  %v2344_v60 = vpop.f32.mrb[13].mxu0 }
 0x6f7   : > { %v1442_v61 = vpop.f32.mrb[14].mxu0 }
 0x6f8   : > { %v2345_v62 = vpop.f32.mrb[15].mxu0 }
 0x6fd   : > { %v1555_v63 = vpop.f32.mrb[16].mxu0 }
 0x6fe   : > { %1562 = vrot.lane.b32.xlu1 %v1555_v63, %s2959_s20  ;;  %v2356_v0 = vpop.f32.mrb[17].mxu0 }
 0x6ff   : > { %v1558_v1 = vpop.f32.mrb[18].mxu0 }
 0x700   : > { %v2357_v2 = vpop.f32.mrb[19].mxu0 }
 0x743   : > { %v1331_v3 = vpop.permute.xlu1 %1330 }
 0x744   : > { %1334 = vst.msk [vmem:[#allocation3] sm:$0xff] %vm1333_vm5, %v1331_v3 }
 0x768   : > { %v1447_v4 = vpop.permute.xlu0 %1446 }
 0x769   : > { %1450 = vst.msk [vmem:[#allocation3] sm:$0xff] %vm1449_vm6, %v1447_v4 }
 0x770   : > { %v1563_v5 = vpop.permute.xlu1 %1562 }
 0x771   : > { %1566 = vst.msk [vmem:[#allocation3] sm:$0xff] %vm1565_vm7, %v1563_v5 }
 0x778   : > { %v1567_v6 = vld [vmem:[#allocation3] sm:$0xff] }
 0x779   : > { %v1568_v7 = vpack.c.bf16 %v1567_v6, %v1567_v6  ;;  %v2257_v6 = vld [vmem:[%s982_s2] ss:$0 sm:$0xff] }
 0x77b   : > { %2363 = vmatmul.mubr.msk.bf16.vlgmr.msra.gmra.mrb[16].mxu1 %vm1053_vm2, %v1568_v7 }
 0x77c   : > { %2382 = vmatprep.mubr.msk.bf16.mxu1 %vm2945_vm1, %v2944_v18  ;;  %2375 = vmatpush3.bf16.msra.mxu1 %v2556_v35 }
 0x77d   : > { %2376 = vmatprep.subr.bf16.mxu1 %v2944_v18 }
 0x780   : > { %2377 = vmatpush3.bf16.msra.mxu1 %v2557_v36 }
 0x781   : > { %2378 = vmatprep.subr.bf16.mxu1 %v2944_v18 }
 0x784   : > { %2379 = vmatpush3.bf16.msra.mxu1 %v2558_v28 }
 0x785   : > { %2380 = vmatprep.subr.bf16.mxu1 %v2944_v18 }
 0x788   : > { %2381 = vmatpush3.bf16.msra.mxu1 %v2559_v37 }
 0x84e   : > { %v1629_v9 = vpop.f32.mrb[16].mxu1 }
 0x84f   : > { %v1630_v10 = vadd.f32 %v2241_v8, %v1629_v9  ;;  %v2364_v11 = vpop.f32.mrb[17].mxu1  ;;  %v2258_v8 = vld [vmem:[%s985_s24] ss:$0 sm:$0xff] }
 0x850   : > { %v1632_v12 = vpop.f32.mrb[18].mxu1  ;;  %v2582_v11 = vld [vmem:[%s3866_s28] sm:$0xff] (!%p2259_p5)  }
 0x851   : > { %v2365_v13 = vpop.f32.mrb[19].mxu1  ;;  %v1635_v14 = vadd.f32 %v1630_v10, %v3551_v20  ;;  %v2960_v12 = vmov (!%p2259_p5), 0.0  }
 0x852   : > { %2386 = vmatprep.subr.bf16.mxu0 (!%p2259_p5), %v2960_v12  ;;  %v2583_v13 = vld [vmem:[%s3867_s13 + $0x8] sm:$0xff] (!%p2259_p5)  }
 0x853   : > { %v1638_v15 = vsel %vm1053_vm2, %v1635_v14, 0.0 }
 0x854   : > { %1639 = vadd.xlane.f32.xlu0 %v1638_v15  ;;  %v1866_v15 = vld [vmem:[%s3868_s22] sm:$0x1] (!%p2259_p5) }
 0x8e1   : > { %v1640_v16 = vpop.xlane.xlu0 %1639 }
 0x8e2   : > { %v1642_v17 = vmul.f32 0.03125, %v1640_v16 }
 0x8e4   : > { %v1643_v19 = vsub.f32 %v1635_v14, %v1642_v17 }
 0x8e6   : > { %v1644_v21 = vmul.f32 %v1643_v19, %v1643_v19 }
 0x8e8   : > { %v1645_v22 = vsel %vm1053_vm2, %v1644_v21, 0.0 }
 0x8e9   : > { %1646 = vadd.xlane.f32.xlu1 %v1645_v22 }
 0x976   : > { %v1647_v20 = vpop.xlane.xlu1 %1646 }
 0x977   : > { %v1648_v25 = vmul.f32 0.03125, %v1647_v20 }
 0x979   : > { %v1649_v26 = vadd.f32 1e-12, %v1648_v25 }
 0x97b   : > { %2576 = vrsqrt.f32 %v1649_v26  ;;  %v1929_v26 = vld [vmem:[#allocation4] sm:$0x1] (!%p2259_p5) }
 0x985   : > { %v2577_v27 = vpop.eup %2576 }
 0x986   : > { %v1651_v30 = vmul.f32 %v2577_v27, %v1643_v19 }
 0x988   : > { %v1658_v32 = vmul.f32 %v2245_v29, %v1651_v30 }
 0x98a   : > { %v1665_v33 = vadd.f32 %v2246_v31, %v1658_v32 }
 0x98c   : > { %v1666_v34 = vpack.c.bf16 %v1665_v33, %v1665_v33 }
 0x98e   : > { %2371 = vmatmul.mubr.msk.bf16.vlgmr.msra.gmra.mrb[20].mxu0 %vm1053_vm2, %v1666_v34 }
 0x98f   : > { %2387 = vmatpush3.bf16.msra.mxu0 (!%p2259_p5), %v2582_v11  ;;  %2390 = vmatprep.mubr.msk.bf16.mxu0 (!%p2259_p5), %vm2961_vm9, %v2960_v12 }
 0x990   : > { %2388 = vmatprep.subr.bf16.mxu0 (!%p2259_p5), %v2960_v12 }
 0x993   : > { %2389 = vmatpush3.bf16.msra.mxu0 (!%p2259_p5), %v2583_v13 }
 0xa61   : > { %v1727_v39 = vpop.f32.mrb[20].mxu0 }
 0xa62   : > { %v1728_v40 = vadd.f32 %v2247_v38, %v1727_v39  ;;  %v2372_v41 = vpop.f32.mrb[21].mxu0 }
 0xa63   : > { %v1730_v42 = vpop.f32.mrb[22].mxu0 }
 0xa64   : > { %v1734_v43 = vmul.f32 0.044715, %v1728_v40  ;;  %v2373_v44 = vpop.f32.mrb[23].mxu0  ;;  %v1733_v50 = vmul.f32 0.5, %v1728_v40 }
 0xa66   : > { %v1735_v45 = vmul.f32 %v1734_v43, %v1728_v40 }
 0xa68   : > { %v1736_v46 = vmul.f32 %v1735_v45, %v1728_v40 }
 0xa6a   : > { %v1737_v47 = vadd.f32 %v1736_v46, %v1728_v40 }
 0xa6c   : > { %v1738_v48 = vmul.f32 0.7978846, %v1737_v47 }
 0xa6e   : > { %2578 = vtanh.f32 %v1738_v48 }
 0xa78   : > { %v2579_v49 = vpop.eup %2578 }
 0xa79   : > { %v1740_v51 = vadd.f32 1.0, %v2579_v49 }
 0xa7b   : > { %v1741_v52 = vmul.f32 %v1740_v51, %v1733_v50 }
 0xa7d   : > { %v1742_v18 = vpack.c.bf16 %v1741_v52, %v1741_v52 }
 0xa7f   : > { %2383 = vmatmul.mubr.msk.bf16.vlgmr.msra.gmra.mrb[20].mxu1 %vm1782_vm8, %v1742_v18 }
 0xb52   : > { %v1820_v54 = vpop.f32.mrb[20].mxu1 }
 0xb53   : > { %v1821_v55 = vadd.f32 %v2251_v53, %v1820_v54  ;;  %v2384_v56 = vpop.f32.mrb[21].mxu1 }
 0xb54   : > { %v1823_v57 = vpop.f32.mrb[22].mxu1 }
 0xb55   : > { %v2385_v58 = vpop.f32.mrb[23].mxu1  ;;  %v1826_v59 = vadd.f32 %v1821_v55, %v1665_v33 }
 0xb57   : > { %v1829_v60 = vsel %vm1053_vm2, %v1826_v59, 0.0 }
 0xb58   : > { %1830 = vadd.xlane.f32.xlu0 %v1829_v60 }
 0xbe5   : > { %v1831_v61 = vpop.xlane.xlu0 %1830 }
 0xbe6   : > { %v1832_v62 = vmul.f32 0.03125, %v1831_v61 }
 0xbe8   : > { %v1833_v63 = vsub.f32 %v1826_v59, %v1832_v62 }
 0xbea   : > { %v1834_v0 = vmul.f32 %v1833_v63, %v1833_v63 }
 0xbec   : > { %v1835_v1 = vsel %vm1053_vm2, %v1834_v0, 0.0 }
 0xbed   : > { %1836 = vadd.xlane.f32.xlu0 %v1835_v1 }
 0xc7a   : > { %v1837_v2 = vpop.xlane.xlu0 %1836 }
 0xc7b   : > { %v1838_v3 = vmul.f32 0.03125, %v1837_v2 }
 0xc7d   : > { %v1839_v4 = vadd.f32 1e-12, %v1838_v3 }
 0xc7f   : > { %2580 = vrsqrt.f32 %v1839_v4 }
 0xc89   : > { %v2581_v5 = vpop.eup %2580 }
 0xc8a   : > { %v1841_v7 = vmul.f32 %v2581_v5, %v1833_v63  ;;  %1860 = sbr.rel (%p2259_p5) target bundleno = 3591 (0xe07), region = 140 }
 0xc8c   : > { %v1848_v9 = vmul.f32 %v2257_v6, %v1841_v7 }
 0xc8e   : > { %v1855_v10 = vadd.f32 %v2258_v8, %v1848_v9 }
 0xc90   : > { %1856 = vst.msk [vmem:[#allocation2] sm:$0xff] %vm1053_vm2, %v1855_v10  ;;  %v1861_v14 = vpack.c.bf16 (!%p2259_p5), %v1855_v10, %v1855_v10 }
 0xc92   : > { %2391 = vmatmul.mubr.msk.bf16.vlgmr.msra.gmra.mrb[0].mxu0 %vm1053_vm2, %v1861_v14 }
 0xd65   : > { %v1916_v16 = vpop.f32.mrb[0].mxu0 }
 0xd66   : > { %v1917_v17 = vadd.f32 %v1916_v16, %v1866_v15  ;;  %v2392_v19 = vpop.f32.mrb[1].mxu0 }
 0xd67   : > { %v1919_v21 = vpop.f32.mrb[2].mxu0 }
 0xd68   : > { %2584 = vtanh.f32 %v1917_v17  ;;  %v2393_v22 = vpop.f32.mrb[3].mxu0 }
 0xd72   : > { %v2585_v24 = vpop.eup %2584 }
 0xd73   : > { %v1924_v20 = vmul.f32 %v2585_v24, %v1923_v23 }
 0xd75   : > { %v1926_v25 = vsel %vm1925_vm10, %v1924_v20, 0.0 }
 0xd76   : > { %1927 = vadd.xlane.f32.xlu0 %v1926_v25 }
 0xe03   : > { %v1928_v27 = vpop.xlane.xlu0 %1927 }
 0xe04   : > { %v1930_v29 = vadd.f32 %v1929_v26, %v1928_v27 }
 0xe06   : > { %1932 = vst.msk [vmem:[%s988_s17] sm:$0x1] %vm1931_vm11, %v1930_v29 }
 0xe07 PF: > { %s47_s29 = sadd.s32 1, %s2934_s29   ;;  %s3871_s23 = sld [smem:[#allocation24_spill]] }
 0xe08   : > { %p44_p1 = scmp.ge.s32.totalorder %s47_s29, 6   ;;  %s3872_s24 = sld [smem:[#allocation25_spill]] }
 0xe09   : > { %s3873_s2 = sld [smem:[#allocation33_spill]]  ;;  %s3874_s25 = sld [smem:[#allocation26_spill]] }
 0xe0a   : > { %s3875_s19 = sld [smem:[#allocation27_spill]]  ;;  %s3876_s3 = sld [smem:[#allocation35_spill]] }
 0xe0b   : > { %s3877_s26 = sld [smem:[#allocation30_spill]]  ;;  %s3878_s27 = sld [smem:[#allocation31_spill]] }
 0xe0c   : > { %s3879_s28 = sld [smem:[#allocation32_spill]]  ;;  %s3880_s4 = sld [smem:[#allocation34_spill]] }
 0xe0d   :  { %46 = sbr.rel (!%p44_p1) target bundleno = 36 (0x24), region = 247 }
 0xe14   :  { %1950 = vsyncpa [#allocation6], 1 }
 0xe15   :  { %1952 = vsyncpa [#allocation6 + $0x1], 1 }
 0xe16   :  { %1953 = vsyncpa [#allocation8], 1 }
 0xe17   :  { %1955 = vsyncpa [#allocation8 + $0x1], 1 }
 0xe18   :  { %1956 = vsyncpa [#allocation11], 1 }
 0xe19   :  { %1958 = vsyncpa [#allocation11 + $0x1], 1 }
 0xe1a   :  { %1959 = vsyncpa [#allocation14], 1 }
 0xe1b   :  { %1961 = vsyncpa [#allocation14 + $0x1], 1 }
 0xe1c   :  { %1962 = vsyncpa [#allocation17], 1 }
 0xe1d   :  { %1964 = vsyncpa [#allocation17 + $0x1], 1 }

</bundles_post_ra>
